<compile_context>
chip_gen: v7x
topology: tpu7x:2x2x1
jax: 0.10.0
libtpu: 0.0.40
codegen_flags: <defaults>
</compile_context>

<pallas_src>
import jax
import jax.numpy as jnp
from jax.experimental import pallas as pl
from jax.experimental.pallas import tpu as pltpu


# ----------------------------------------------------------------------------
# Fused Pallas kernel: full GCN forward
# ----------------------------------------------------------------------------

def _gcn_fused_kernel(a_m_ref, at_m_ref, ue0_ref, ie0_ref,
                      uw_ref, iw_ref, ucw_ref, icw_ref,
                      uo_ref, io_ref):
    """Entire GCN forward in one kernel (all arrays VMEM-resident).

    a_m_ref:  (B*U, I)   bf16  behaviors of the dense adjacency, stacked on M
    at_m_ref: (B*I, U)   bf16  transposed (row-normalized) adjacency, on M
    ue0_ref:  (U, D)     f32   initial user embedding
    ie0_ref:  (I, D)     f32   initial item embedding
    uw_ref:   (L, D, D)  bf16  per-layer u_w
    iw_ref:   (L, D, D)  bf16  per-layer i_w
    ucw_ref:  (L, D, D)  bf16  per-layer chunks of u_concatenation_w
    icw_ref:  (L, D, D)  bf16  per-layer chunks of i_concatenation_w
    uo_ref:   ((B+1)*U, D) f32  [user_out ; users_out_b0 ; ... ; users_out_b{B-1}]
    io_ref:   ((B+1)*I, D) f32  [item_out ; items_out_b0 ; ... ; items_out_b{B-1}]
    """
    BU, I = a_m_ref.shape
    BI, U = at_m_ref.shape
    L, D, _ = uw_ref.shape
    B = BU // U
    f32 = jnp.float32
    bf16 = jnp.bfloat16
    inv_b = 1.0 / B

    # Loaded once; reused every layer.
    a_m = a_m_ref[...]                       # (B*U, I) bf16
    at_m = at_m_ref[...]                     # (B*I, U) bf16
    ue = ue0_ref[...]                        # (U, D) f32 current user embedding
    ie = ie0_ref[...]                        # (I, D) f32 current item embedding

    u_acc = jnp.zeros(((B + 1) * U, D), f32)  # fused concat-tail accumulators
    i_acc = jnp.zeros(((B + 1) * I, D), f32)

    for l in range(L):                        # static unroll (L is small)
        # --- reassociated projection: (A @ E) @ W == A @ (E @ W) -----------
        p_u = jnp.dot(ie.astype(bf16), uw_ref[l],
                      preferred_element_type=f32)            # (I, D)
        p_i = jnp.dot(ue.astype(bf16), iw_ref[l],
                      preferred_element_type=f32)            # (U, D)

        # --- batched spmm: ONE MXU call per side, behaviors along M --------
        proj_u = jnp.dot(a_m, p_u.astype(bf16),
                         preferred_element_type=f32)         # (B*U, D)
        proj_i = jnp.dot(at_m, p_i.astype(bf16),
                         preferred_element_type=f32)         # (B*I, D)

        # --- mean over behaviors: B-1 VPU adds on sublane blocks -----------
        mean_u = proj_u[0:U]
        for b in range(1, B):
            mean_u = mean_u + proj_u[b * U:(b + 1) * U]
        mean_u = mean_u * inv_b                              # (U, D)
        mean_i = proj_i[0:I]
        for b in range(1, B):
            mean_i = mean_i + proj_i[b * I:(b + 1) * I]
        mean_i = mean_i * inv_b                              # (I, D)

        # --- sigmoids in f32 (v5e VPU/EUP have no bf16) ---------------------
        s_mean_u = jax.nn.sigmoid(mean_u)
        s_mean_i = jax.nn.sigmoid(mean_i)
        s_behav_u = jax.nn.sigmoid(proj_u)                   # (B*U, D)
        s_behav_i = jax.nn.sigmoid(proj_i)                   # (B*I, D)

        # --- fused concat + projection tail: ONE matmul per side -----------
        # cat_l(E_l) @ W == sum_l E_l @ W[l*D:(l+1)*D]; mean + behaviors are
        # stacked along M so a single (.., D) @ (D, D) dot handles all of them.
        stack_u = jnp.concatenate([s_mean_u, s_behav_u], axis=0)  # ((B+1)*U, D)
        stack_i = jnp.concatenate([s_mean_i, s_behav_i], axis=0)  # ((B+1)*I, D)
        u_acc = u_acc + jnp.dot(stack_u.astype(bf16), ucw_ref[l],
                                preferred_element_type=f32)
        i_acc = i_acc + jnp.dot(stack_i.astype(bf16), icw_ref[l],
                                preferred_element_type=f32)

        # next layer consumes this layer's mean embeddings
        ue = s_mean_u
        ie = s_mean_i

    uo_ref[...] = u_acc
    io_ref[...] = i_acc


# ----------------------------------------------------------------------------
# Wrapper
# ----------------------------------------------------------------------------

def gcn_forward(params, a_stack, at_stack):
    user_emb = params["user_embedding"]     # (U, D) f32
    item_emb = params["item_embedding"]     # (I, D) f32
    U, D = user_emb.shape
    I = item_emb.shape[0]
    B = a_stack.shape[0]
    L = len(params["layers"])
    bf16 = jnp.bfloat16

    # Behaviors stacked along M (layout-free: U, I are sublane multiples),
    # cast bf16 for single-pass MXU and half the DMA bytes.
    a_m = a_stack.reshape(B * U, I).astype(bf16)             # (B*U, I)
    at_m = at_stack.reshape(B * I, U).astype(bf16)           # (B*I, U)
    uw = jnp.stack([lyr["u_w"] for lyr in params["layers"]]).astype(bf16)
    iw = jnp.stack([lyr["i_w"] for lyr in params["layers"]]).astype(bf16)
    # Per-layer (D, D) chunks of the concat weights (no zero padding).
    ucw = params["u_concatenation_w"].reshape(L, D, D).astype(bf16)
    icw = params["i_concatenation_w"].reshape(L, D, D).astype(bf16)

    # Advisory cost estimate for the XLA scheduler around the custom call.
    flops = L * (2 * (I + U) * D * D                 # p_u / p_i
                 + 4 * B * U * I * D                 # batched spmm, both sides
                 + 2 * (B + 1) * (U + I) * D * D)    # fused concat tails
    transcendentals = L * (B + 1) * (U + I) * D      # sigmoids
    bytes_accessed = (2 * (a_m.size + at_m.size + uw.size + iw.size
                           + ucw.size + icw.size)
                      + 4 * (user_emb.size + item_emb.size
                             + (B + 1) * (U + I) * D))

    vmem_spec = pl.BlockSpec(memory_space=pltpu.MemorySpace.VMEM)

    uo, io = pl.pallas_call(
        _gcn_fused_kernel,
        out_shape=(jax.ShapeDtypeStruct(((B + 1) * U, D), jnp.float32),
                   jax.ShapeDtypeStruct(((B + 1) * I, D), jnp.float32)),
        in_specs=[vmem_spec] * 8,
        out_specs=(vmem_spec, vmem_spec),
        cost_estimate=pl.CostEstimate(flops=int(flops),
                                      transcendentals=int(transcendentals),
                                      bytes_accessed=int(bytes_accessed)),
    )(a_m, at_m, user_emb, item_emb, uw, iw, ucw, icw)

    # Unpack the M-stacked slabs into the module's output shapes (XLA-side).
    user_out = uo[:U]                                        # (U, D)
    users_out = uo[U:].reshape(B, U, D)                      # (B, U, D)
    item_out = io[:I]                                        # (I, D)
    items_out = io[I:].reshape(B, I, D)                      # (B, I, D)
    return user_out, item_out, users_out, items_out


# ----------------------------------------------------------------------------
# Parameter construction (deterministic, xavier_uniform like torch)
# ----------------------------------------------------------------------------

def xavier_uniform(key, shape):
    fan_in, fan_out = shape[0], shape[1]
    bound = (6.0 / (fan_in + fan_out)) ** 0.5
    return jax.random.uniform(key, shape, jnp.float32, -bound, bound)


def init_params(key, user_num, item_num, hidden_dim, gnn_layer):
    keys = jax.random.split(key, 4 + 2 * gnn_layer)
    params = {
        "user_embedding": xavier_uniform(keys[0], (user_num, hidden_dim)),
        "item_embedding": xavier_uniform(keys[1], (item_num, hidden_dim)),
        "u_concatenation_w": xavier_uniform(
            keys[2], (gnn_layer * hidden_dim, hidden_dim)),
        "i_concatenation_w": xavier_uniform(
            keys[3], (gnn_layer * hidden_dim, hidden_dim)),
        "layers": [],
    }
    for l in range(gnn_layer):
        params["layers"].append({
            "u_w": xavier_uniform(keys[4 + 2 * l], (hidden_dim, hidden_dim)),
            "i_w": xavier_uniform(keys[5 + 2 * l], (hidden_dim, hidden_dim)),
        })
    return params


# ----------------------------------------------------------------------------
# Pure-JAX reference (mirrors the torch forward literally)
# ----------------------------------------------------------------------------

def reference_forward(params, a_stack, at_stack):
    ue = params["user_embedding"]
    ie = params["item_embedding"]
    all_u, all_i, all_us, all_is = [], [], [], []
    for lyr in params["layers"]:
        us = jnp.einsum("bui,id->bud", a_stack, ie)     # spmm per behavior
        is_ = jnp.einsum("biu,ud->bid", at_stack, ue)
        ue = jax.nn.sigmoid(jnp.mean(us, axis=0) @ lyr["u_w"])
        ie = jax.nn.sigmoid(jnp.mean(is_, axis=0) @ lyr["i_w"])
        uss = jax.nn.sigmoid(us @ lyr["u_w"])
        iss = jax.nn.sigmoid(is_ @ lyr["i_w"])
        all_u.append(ue)
        all_i.append(ie)
        all_us.append(uss)
        all_is.append(iss)
    u_cat = jnp.concatenate(all_u, axis=1)
    i_cat = jnp.concatenate(all_i, axis=1)
    us_cat = jnp.concatenate(all_us, axis=2)
    is_cat = jnp.concatenate(all_is, axis=2)
    return (u_cat @ params["u_concatenation_w"],
            i_cat @ params["i_concatenation_w"],
            us_cat @ params["u_concatenation_w"],
            is_cat @ params["i_concatenation_w"])


# ----------------------------------------------------------------------------
# Main
# ----------------------------------------------------------------------------

if __name__ == "__main__":
    USER_NUM = 64
    ITEM_NUM = 48
    HIDDEN = 32
    GNN_LAYER = 2
    NUM_BEHAVIOR = 3

    root = jax.random.PRNGKey(0)
    k_params, k_adj = jax.random.split(root)

    params = init_params(k_params, USER_NUM, ITEM_NUM, HIDDEN, GNN_LAYER)

    # Synthetic dense behavior adjacency matrices (row-normalized random graph).
    raw = jax.random.uniform(k_adj, (NUM_BEHAVIOR, USER_NUM, ITEM_NUM))
    adj = (raw > 0.8).astype(jnp.float32)
    a_stack = adj / (jnp.sum(adj, axis=2, keepdims=True) + 1e-6)     # (B, U, I)
    at_stack = jnp.transpose(adj, (0, 2, 1))
    at_stack = at_stack / (jnp.sum(at_stack, axis=2, keepdims=True) + 1e-6)

    outs = gcn_forward(params, a_stack, at_stack)
    user_out, item_out, users_out, items_out = jax.block_until_ready(outs)

    assert user_out.shape == (USER_NUM, HIDDEN)
    assert item_out.shape == (ITEM_NUM, HIDDEN)
    assert users_out.shape == (NUM_BEHAVIOR, USER_NUM, HIDDEN)
    assert items_out.shape == (NUM_BEHAVIOR, ITEM_NUM, HIDDEN)

    # Numerical check vs. a straightforward jnp implementation.  Tolerance is
    # loose because the kernel feeds the MXU bf16 (f32 accumulation) and
    # reassociates the spmm/projection; structural/indexing bugs would produce
    # O(1) errors, not the ~1e-3 bf16 rounding observed.
    refs = reference_forward(params, a_stack, at_stack)
    for got, want in zip((user_out, item_out, users_out, items_out), refs):
        assert got.shape == want.shape
        assert bool(jnp.allclose(got, want, atol=5e-2, rtol=5e-2)), (
            float(jnp.max(jnp.abs(got - want))))

    print("KERNEL_OK")
</pallas_src>

<mosaic_0001>
module attributes {stable_mosaic.version = 11 : i64} {
  func.func @_gcn_fused_kernel(%arg0: memref<192x48xbf16, #tpu.memory_space<vmem>>, %arg1: memref<144x64xbf16, #tpu.memory_space<vmem>>, %arg2: memref<64x32xf32, #tpu.memory_space<vmem>>, %arg3: memref<48x32xf32, #tpu.memory_space<vmem>>, %arg4: memref<2x32x32xbf16, #tpu.memory_space<vmem>>, %arg5: memref<2x32x32xbf16, #tpu.memory_space<vmem>>, %arg6: memref<2x32x32xbf16, #tpu.memory_space<vmem>>, %arg7: memref<2x32x32xbf16, #tpu.memory_space<vmem>>, %arg8: memref<256x32xf32, #tpu.memory_space<vmem>>, %arg9: memref<192x32xf32, #tpu.memory_space<vmem>>) attributes {dimension_semantics = [], scalar_prefetch = 0 : i64, scratch_operands = 0 : i64, tpu.core_type = #tpu.core_type<tc>} {
    %c0 = arith.constant 0 : index
    %c0_0 = arith.constant 0 : index
    %0 = vector.load %arg0[%c0, %c0_0] : memref<192x48xbf16, #tpu.memory_space<vmem>>, vector<192x48xbf16>
    %c0_1 = arith.constant 0 : index
    %c0_2 = arith.constant 0 : index
    %1 = vector.load %arg1[%c0_1, %c0_2] : memref<144x64xbf16, #tpu.memory_space<vmem>>, vector<144x64xbf16>
    %c0_3 = arith.constant 0 : index
    %c0_4 = arith.constant 0 : index
    %2 = vector.load %arg2[%c0_3, %c0_4] : memref<64x32xf32, #tpu.memory_space<vmem>>, vector<64x32xf32>
    %c0_5 = arith.constant 0 : index
    %c0_6 = arith.constant 0 : index
    %3 = vector.load %arg3[%c0_5, %c0_6] : memref<48x32xf32, #tpu.memory_space<vmem>>, vector<48x32xf32>
    %cst = arith.constant 0.000000e+00 : f32
    %4 = vector.broadcast %cst : f32 to vector<256x32xf32>
    %cst_7 = arith.constant 0.000000e+00 : f32
    %5 = vector.broadcast %cst_7 : f32 to vector<192x32xf32>
    %6 = arith.truncf %3 : vector<48x32xf32> to vector<48x32xbf16>
    %c0_8 = arith.constant 0 : index
    %c0_9 = arith.constant 0 : index
    %c0_10 = arith.constant 0 : index
    %7 = vector.load %arg4[%c0_8, %c0_9, %c0_10] : memref<2x32x32xbf16, #tpu.memory_space<vmem>>, vector<1x32x32xbf16>
    %8 = vector.shape_cast %7 : vector<1x32x32xbf16> to vector<32x32xbf16>
    %cst_11 = arith.constant dense<0.000000e+00> : vector<48x32xf32>
    %9 = tpu.matmul %6, %8, %cst_11 {dimension_numbers = #tpu.dot_dimension_numbers<[1], [0], [0], [1], [0, 0, 1, 1], [], []>} : vector<48x32xbf16>, vector<32x32xbf16>, vector<48x32xf32> -> vector<48x32xf32>
    %10 = arith.truncf %2 : vector<64x32xf32> to vector<64x32xbf16>
    %c0_12 = arith.constant 0 : index
    %c0_13 = arith.constant 0 : index
    %c0_14 = arith.constant 0 : index
    %11 = vector.load %arg5[%c0_12, %c0_13, %c0_14] : memref<2x32x32xbf16, #tpu.memory_space<vmem>>, vector<1x32x32xbf16>
    %12 = vector.shape_cast %11 : vector<1x32x32xbf16> to vector<32x32xbf16>
    %cst_15 = arith.constant dense<0.000000e+00> : vector<64x32xf32>
    %13 = tpu.matmul %10, %12, %cst_15 {dimension_numbers = #tpu.dot_dimension_numbers<[1], [0], [0], [1], [0, 0, 1, 1], [], []>} : vector<64x32xbf16>, vector<32x32xbf16>, vector<64x32xf32> -> vector<64x32xf32>
    %14 = arith.truncf %9 : vector<48x32xf32> to vector<48x32xbf16>
    %cst_16 = arith.constant dense<0.000000e+00> : vector<192x32xf32>
    %15 = tpu.matmul %0, %14, %cst_16 {dimension_numbers = #tpu.dot_dimension_numbers<[1], [0], [0], [1], [0, 0, 1, 1], [], []>} : vector<192x48xbf16>, vector<48x32xbf16>, vector<192x32xf32> -> vector<192x32xf32>
    %16 = arith.truncf %13 : vector<64x32xf32> to vector<64x32xbf16>
    %cst_17 = arith.constant dense<0.000000e+00> : vector<144x32xf32>
    %17 = tpu.matmul %1, %16, %cst_17 {dimension_numbers = #tpu.dot_dimension_numbers<[1], [0], [0], [1], [0, 0, 1, 1], [], []>} : vector<144x64xbf16>, vector<64x32xbf16>, vector<144x32xf32> -> vector<144x32xf32>
    %18 = vector.extract_strided_slice %15 {offsets = [0, 0], sizes = [64, 32], strides = [1, 1]} : vector<192x32xf32> to vector<64x32xf32>
    %19 = vector.extract_strided_slice %15 {offsets = [64, 0], sizes = [64, 32], strides = [1, 1]} : vector<192x32xf32> to vector<64x32xf32>
    %20 = arith.addf %18, %19 : vector<64x32xf32>
    %21 = vector.extract_strided_slice %15 {offsets = [128, 0], sizes = [64, 32], strides = [1, 1]} : vector<192x32xf32> to vector<64x32xf32>
    %22 = arith.addf %20, %21 : vector<64x32xf32>
    %cst_18 = arith.constant 0.333333343 : f32
    %23 = vector.broadcast %cst_18 : f32 to vector<64x32xf32>
    %24 = arith.mulf %22, %23 : vector<64x32xf32>
    %25 = vector.extract_strided_slice %17 {offsets = [0, 0], sizes = [48, 32], strides = [1, 1]} : vector<144x32xf32> to vector<48x32xf32>
    %26 = vector.extract_strided_slice %17 {offsets = [48, 0], sizes = [48, 32], strides = [1, 1]} : vector<144x32xf32> to vector<48x32xf32>
    %27 = arith.addf %25, %26 : vector<48x32xf32>
    %28 = vector.extract_strided_slice %17 {offsets = [96, 0], sizes = [48, 32], strides = [1, 1]} : vector<144x32xf32> to vector<48x32xf32>
    %29 = arith.addf %27, %28 : vector<48x32xf32>
    %cst_19 = arith.constant 0.333333343 : f32
    %30 = vector.broadcast %cst_19 : f32 to vector<48x32xf32>
    %31 = arith.mulf %29, %30 : vector<48x32xf32>
    %32 = arith.negf %24 : vector<64x32xf32>
    %33 = math.exp %32 : vector<64x32xf32>
    %cst_20 = arith.constant 1.000000e+00 : f32
    %34 = vector.broadcast %cst_20 : f32 to vector<64x32xf32>
    %35 = arith.addf %34, %33 : vector<64x32xf32>
    %36 = arith.divf %34, %35 : vector<64x32xf32>
    %37 = arith.negf %31 : vector<48x32xf32>
    %38 = math.exp %37 : vector<48x32xf32>
    %cst_21 = arith.constant 1.000000e+00 : f32
    %39 = vector.broadcast %cst_21 : f32 to vector<48x32xf32>
    %40 = arith.addf %39, %38 : vector<48x32xf32>
    %41 = arith.divf %39, %40 : vector<48x32xf32>
    %42 = arith.negf %15 : vector<192x32xf32>
    %43 = math.exp %42 : vector<192x32xf32>
    %cst_22 = arith.constant 1.000000e+00 : f32
    %44 = vector.broadcast %cst_22 : f32 to vector<192x32xf32>
    %45 = arith.addf %44, %43 : vector<192x32xf32>
    %46 = arith.divf %44, %45 : vector<192x32xf32>
    %47 = arith.negf %17 : vector<144x32xf32>
    %48 = math.exp %47 : vector<144x32xf32>
    %cst_23 = arith.constant 1.000000e+00 : f32
    %49 = vector.broadcast %cst_23 : f32 to vector<144x32xf32>
    %50 = arith.addf %49, %48 : vector<144x32xf32>
    %51 = arith.divf %49, %50 : vector<144x32xf32>
    %52 = tpu.concatenate %36, %46 in 0 : vector<64x32xf32>, vector<192x32xf32> -> vector<256x32xf32>
    %53 = tpu.concatenate %41, %51 in 0 : vector<48x32xf32>, vector<144x32xf32> -> vector<192x32xf32>
    %54 = arith.truncf %52 : vector<256x32xf32> to vector<256x32xbf16>
    %c0_24 = arith.constant 0 : index
    %c0_25 = arith.constant 0 : index
    %c0_26 = arith.constant 0 : index
    %55 = vector.load %arg6[%c0_24, %c0_25, %c0_26] : memref<2x32x32xbf16, #tpu.memory_space<vmem>>, vector<1x32x32xbf16>
    %56 = vector.shape_cast %55 : vector<1x32x32xbf16> to vector<32x32xbf16>
    %cst_27 = arith.constant dense<0.000000e+00> : vector<256x32xf32>
    %57 = tpu.matmul %54, %56, %cst_27 {dimension_numbers = #tpu.dot_dimension_numbers<[1], [0], [0], [1], [0, 0, 1, 1], [], []>} : vector<256x32xbf16>, vector<32x32xbf16>, vector<256x32xf32> -> vector<256x32xf32>
    %58 = arith.addf %4, %57 : vector<256x32xf32>
    %59 = arith.truncf %53 : vector<192x32xf32> to vector<192x32xbf16>
    %c0_28 = arith.constant 0 : index
    %c0_29 = arith.constant 0 : index
    %c0_30 = arith.constant 0 : index
    %60 = vector.load %arg7[%c0_28, %c0_29, %c0_30] : memref<2x32x32xbf16, #tpu.memory_space<vmem>>, vector<1x32x32xbf16>
    %61 = vector.shape_cast %60 : vector<1x32x32xbf16> to vector<32x32xbf16>
    %cst_31 = arith.constant dense<0.000000e+00> : vector<192x32xf32>
    %62 = tpu.matmul %59, %61, %cst_31 {dimension_numbers = #tpu.dot_dimension_numbers<[1], [0], [0], [1], [0, 0, 1, 1], [], []>} : vector<192x32xbf16>, vector<32x32xbf16>, vector<192x32xf32> -> vector<192x32xf32>
    %63 = arith.addf %5, %62 : vector<192x32xf32>
    %64 = arith.truncf %41 : vector<48x32xf32> to vector<48x32xbf16>
    %c1 = arith.constant 1 : index
    %c0_32 = arith.constant 0 : index
    %c0_33 = arith.constant 0 : index
    %65 = vector.load %arg4[%c1, %c0_32, %c0_33] : memref<2x32x32xbf16, #tpu.memory_space<vmem>>, vector<1x32x32xbf16>
    %66 = vector.shape_cast %65 : vector<1x32x32xbf16> to vector<32x32xbf16>
    %cst_34 = arith.constant dense<0.000000e+00> : vector<48x32xf32>
    %67 = tpu.matmul %64, %66, %cst_34 {dimension_numbers = #tpu.dot_dimension_numbers<[1], [0], [0], [1], [0, 0, 1, 1], [], []>} : vector<48x32xbf16>, vector<32x32xbf16>, vector<48x32xf32> -> vector<48x32xf32>
    %68 = arith.truncf %36 : vector<64x32xf32> to vector<64x32xbf16>
    %c1_35 = arith.constant 1 : index
    %c0_36 = arith.constant 0 : index
    %c0_37 = arith.constant 0 : index
    %69 = vector.load %arg5[%c1_35, %c0_36, %c0_37] : memref<2x32x32xbf16, #tpu.memory_space<vmem>>, vector<1x32x32xbf16>
    %70 = vector.shape_cast %69 : vector<1x32x32xbf16> to vector<32x32xbf16>
    %cst_38 = arith.constant dense<0.000000e+00> : vector<64x32xf32>
    %71 = tpu.matmul %68, %70, %cst_38 {dimension_numbers = #tpu.dot_dimension_numbers<[1], [0], [0], [1], [0, 0, 1, 1], [], []>} : vector<64x32xbf16>, vector<32x32xbf16>, vector<64x32xf32> -> vector<64x32xf32>
    %72 = arith.truncf %67 : vector<48x32xf32> to vector<48x32xbf16>
    %cst_39 = arith.constant dense<0.000000e+00> : vector<192x32xf32>
    %73 = tpu.matmul %0, %72, %cst_39 {dimension_numbers = #tpu.dot_dimension_numbers<[1], [0], [0], [1], [0, 0, 1, 1], [], []>} : vector<192x48xbf16>, vector<48x32xbf16>, vector<192x32xf32> -> vector<192x32xf32>
    %74 = arith.truncf %71 : vector<64x32xf32> to vector<64x32xbf16>
    %cst_40 = arith.constant dense<0.000000e+00> : vector<144x32xf32>
    %75 = tpu.matmul %1, %74, %cst_40 {dimension_numbers = #tpu.dot_dimension_numbers<[1], [0], [0], [1], [0, 0, 1, 1], [], []>} : vector<144x64xbf16>, vector<64x32xbf16>, vector<144x32xf32> -> vector<144x32xf32>
    %76 = vector.extract_strided_slice %73 {offsets = [0, 0], sizes = [64, 32], strides = [1, 1]} : vector<192x32xf32> to vector<64x32xf32>
    %77 = vector.extract_strided_slice %73 {offsets = [64, 0], sizes = [64, 32], strides = [1, 1]} : vector<192x32xf32> to vector<64x32xf32>
    %78 = arith.addf %76, %77 : vector<64x32xf32>
    %79 = vector.extract_strided_slice %73 {offsets = [128, 0], sizes = [64, 32], strides = [1, 1]} : vector<192x32xf32> to vector<64x32xf32>
    %80 = arith.addf %78, %79 : vector<64x32xf32>
    %cst_41 = arith.constant 0.333333343 : f32
    %81 = vector.broadcast %cst_41 : f32 to vector<64x32xf32>
    %82 = arith.mulf %80, %81 : vector<64x32xf32>
    %83 = vector.extract_strided_slice %75 {offsets = [0, 0], sizes = [48, 32], strides = [1, 1]} : vector<144x32xf32> to vector<48x32xf32>
    %84 = vector.extract_strided_slice %75 {offsets = [48, 0], sizes = [48, 32], strides = [1, 1]} : vector<144x32xf32> to vector<48x32xf32>
    %85 = arith.addf %83, %84 : vector<48x32xf32>
    %86 = vector.extract_strided_slice %75 {offsets = [96, 0], sizes = [48, 32], strides = [1, 1]} : vector<144x32xf32> to vector<48x32xf32>
    %87 = arith.addf %85, %86 : vector<48x32xf32>
    %cst_42 = arith.constant 0.333333343 : f32
    %88 = vector.broadcast %cst_42 : f32 to vector<48x32xf32>
    %89 = arith.mulf %87, %88 : vector<48x32xf32>
    %90 = arith.negf %82 : vector<64x32xf32>
    %91 = math.exp %90 : vector<64x32xf32>
    %cst_43 = arith.constant 1.000000e+00 : f32
    %92 = vector.broadcast %cst_43 : f32 to vector<64x32xf32>
    %93 = arith.addf %92, %91 : vector<64x32xf32>
    %94 = arith.divf %92, %93 : vector<64x32xf32>
    %95 = arith.negf %89 : vector<48x32xf32>
    %96 = math.exp %95 : vector<48x32xf32>
    %cst_44 = arith.constant 1.000000e+00 : f32
    %97 = vector.broadcast %cst_44 : f32 to vector<48x32xf32>
    %98 = arith.addf %97, %96 : vector<48x32xf32>
    %99 = arith.divf %97, %98 : vector<48x32xf32>
    %100 = arith.negf %73 : vector<192x32xf32>
    %101 = math.exp %100 : vector<192x32xf32>
    %cst_45 = arith.constant 1.000000e+00 : f32
    %102 = vector.broadcast %cst_45 : f32 to vector<192x32xf32>
    %103 = arith.addf %102, %101 : vector<192x32xf32>
    %104 = arith.divf %102, %103 : vector<192x32xf32>
    %105 = arith.negf %75 : vector<144x32xf32>
    %106 = math.exp %105 : vector<144x32xf32>
    %cst_46 = arith.constant 1.000000e+00 : f32
    %107 = vector.broadcast %cst_46 : f32 to vector<144x32xf32>
    %108 = arith.addf %107, %106 : vector<144x32xf32>
    %109 = arith.divf %107, %108 : vector<144x32xf32>
    %110 = tpu.concatenate %94, %104 in 0 : vector<64x32xf32>, vector<192x32xf32> -> vector<256x32xf32>
    %111 = tpu.concatenate %99, %109 in 0 : vector<48x32xf32>, vector<144x32xf32> -> vector<192x32xf32>
    %112 = arith.truncf %110 : vector<256x32xf32> to vector<256x32xbf16>
    %c1_47 = arith.constant 1 : index
    %c0_48 = arith.constant 0 : index
    %c0_49 = arith.constant 0 : index
    %113 = vector.load %arg6[%c1_47, %c0_48, %c0_49] : memref<2x32x32xbf16, #tpu.memory_space<vmem>>, vector<1x32x32xbf16>
    %114 = vector.shape_cast %113 : vector<1x32x32xbf16> to vector<32x32xbf16>
    %cst_50 = arith.constant dense<0.000000e+00> : vector<256x32xf32>
    %115 = tpu.matmul %112, %114, %cst_50 {dimension_numbers = #tpu.dot_dimension_numbers<[1], [0], [0], [1], [0, 0, 1, 1], [], []>} : vector<256x32xbf16>, vector<32x32xbf16>, vector<256x32xf32> -> vector<256x32xf32>
    %116 = arith.addf %58, %115 : vector<256x32xf32>
    %117 = arith.truncf %111 : vector<192x32xf32> to vector<192x32xbf16>
    %c1_51 = arith.constant 1 : index
    %c0_52 = arith.constant 0 : index
    %c0_53 = arith.constant 0 : index
    %118 = vector.load %arg7[%c1_51, %c0_52, %c0_53] : memref<2x32x32xbf16, #tpu.memory_space<vmem>>, vector<1x32x32xbf16>
    %119 = vector.shape_cast %118 : vector<1x32x32xbf16> to vector<32x32xbf16>
    %cst_54 = arith.constant dense<0.000000e+00> : vector<192x32xf32>
    %120 = tpu.matmul %117, %119, %cst_54 {dimension_numbers = #tpu.dot_dimension_numbers<[1], [0], [0], [1], [0, 0, 1, 1], [], []>} : vector<192x32xbf16>, vector<32x32xbf16>, vector<192x32xf32> -> vector<192x32xf32>
    %121 = arith.addf %63, %120 : vector<192x32xf32>
    %c0_55 = arith.constant 0 : index
    %c0_56 = arith.constant 0 : index
    %122 = vector.load %arg8[%c0_55, %c0_56] : memref<256x32xf32, #tpu.memory_space<vmem>>, vector<256x32xf32>
    tpu.vector_store %arg8[%c0_55, %c0_56], %116 {strides = array<i32>} : memref<256x32xf32, #tpu.memory_space<vmem>>, vector<256x32xf32>,
    %c0_57 = arith.constant 0 : index
    %c0_58 = arith.constant 0 : index
    %123 = vector.load %arg9[%c0_57, %c0_58] : memref<192x32xf32, #tpu.memory_space<vmem>>, vector<192x32xf32>
    tpu.vector_store %arg9[%c0_57, %c0_58], %121 {strides = array<i32>} : memref<192x32xf32, #tpu.memory_space<vmem>>, vector<192x32xf32>,
    return
  }
}

</mosaic_0001>

<bundles_post_ra>
// kernel: tpu_custom_call.1
= control target key start
LH: loop header
LB: loop body
LE: loop exit
PB: predicated region body
PF: predicated region fallthrough
CT: control target
= control target key end

     0   :  { %v4083_v1 = vmov 0.0   ;;  %vm4084_vm0 = vmmov 0   ;;  %vm107_vm1 = vcmask 261120   ;;  %vm334_vm2 = vcmask 392192   ;;  %s5396_s5 = inlined_call_operand.vmem [shape: bf16[2,32,32], index: 5, kind: input, shape index: {}]   ;;  %s5397_s2 = inlined_call_operand.vmem [shape: f32[64,32], index: 2, kind: input, shape index: {}]   ;;  %s5398_s4 = inlined_call_operand.vmem [shape: bf16[2,32,32], index: 4, kind: input, shape index: {}]   ;;  %s5399_s3 = inlined_call_operand.vmem [shape: f32[48,32], index: 3, kind: input, shape index: {}]   ;;  %s5400_s1 = inlined_call_operand.vmem [shape: bf16[144,64], index: 1, kind: input, shape index: {}]   ;;  %s5401_s0 = inlined_call_operand.vmem [shape: bf16[192,48], index: 0, kind: input, shape index: {}]   ;;  %s5402_s6 = inlined_call_operand.vmem [shape: bf16[2,32,32], index: 6, kind: input, shape index: {}]   ;;  %s5403_s7 = inlined_call_operand.vmem [shape: bf16[2,32,32], index: 7, kind: input, shape index: {}]   ;;  %s5404_s8 = inlined_call_operand.vmem [shape: f32[256,32], index: 8, kind: output, shape index: {0}]   ;;  %s5405_s9 = inlined_call_operand.vmem [shape: f32[192,32], index: 9, kind: output, shape index: {1}]  }
   0x1   :  { %v3578_v0 = vld [vmem:[%s5396_s5] sm:$0xff]   ;;  %3188 = vmatprep.subr.bf16.mxu0 %v4083_v1  ;;  %3192 = vmatprep.mubr.msk.bf16.mxu0 %vm4084_vm0, %v4083_v1  ;;  %v3579_v2 = vld [vmem:[%s5396_s5 + $0x8] sm:$0xff]   ;;  %v76_v6 = vld [vmem:[%s5397_s2 + $0x10] sm:$0xff]  ;;  %vm549_vm3 = vcmask 523264  }
   0x2   :  { %3204 = vmatprep.subr.bf16.mxu1 %v3578_v0  ;;  %v74_v3 = vld [vmem:[%s5397_s2] sm:$0xff]  ;;  %v75_v4 = vld [vmem:[%s5397_s2 + $0x8] sm:$0xff]  ;;  %v77_v7 = vld [vmem:[%s5397_s2 + $0x18] sm:$0xff] }
   0x3   :  { %3205 = vmatpush3.bf16.msra.mxu1 %v3578_v0  ;;  %v174_v5 = vpack.c.bf16 %v75_v4, %v74_v3  ;;  %v78_v8 = vld [vmem:[%s5397_s2 + $0x20] sm:$0xff]  ;;  %v79_v9 = vld [vmem:[%s5397_s2 + $0x28] sm:$0xff]  ;;  %v175_v11 = vpack.c.bf16 %v77_v7, %v76_v6  ;;  %v80_v17 = vld [vmem:[%s5397_s2 + $0x30] sm:$0xff] }
   0x4   :  { %3206 = vmatprep.subr.bf16.mxu1 %v3579_v2  ;;  %v3580_v10 = vld [vmem:[%s5398_s4] sm:$0xff]   ;;  %v176_v12 = vpack.c.bf16 %v79_v9, %v78_v8  ;;  %v3581_v13 = vld [vmem:[%s5398_s4 + $0x8] sm:$0xff]   ;;  %v81_v18 = vld [vmem:[%s5397_s2 + $0x38] sm:$0xff] }
   0x5   :  { %3208 = vmatprep.mubr.msk.bf16.mxu1 %vm107_vm1, %v174_v5  ;;  %3189 = vmatpush3.bf16.msra.mxu0 %v3580_v10  ;;  %v82_v14 = vld [vmem:[%s5399_s3] sm:$0xff]  ;;  %v83_v15 = vld [vmem:[%s5399_s3 + $0x8] sm:$0xff]  ;;  %v177_v19 = vpack.c.bf16 %v81_v18, %v80_v17  ;;  %v84_v20 = vld [vmem:[%s5399_s3 + $0x10] sm:$0xff] }
   0x6   :  { %3190 = vmatprep.subr.bf16.mxu0 %v4083_v1  ;;  %v88_v16 = vpack.c.bf16 %v83_v15, %v82_v14  ;;  %v85_v21 = vld [vmem:[%s5399_s3 + $0x18] sm:$0xff]  ;;  %v86_v23 = vld [vmem:[%s5399_s3 + $0x20] sm:$0xff]  ;;  %v87_v24 = vld [vmem:[%s5399_s3 + $0x28] sm:$0xff] }
   0x7   :  { %3207 = vmatpush3.bf16.msra.mxu1 %v3579_v2  ;;  %v89_v22 = vpack.c.bf16 %v85_v21, %v84_v20  ;;  %v90_v25 = vpack.c.bf16 %v87_v24, %v86_v23  ;;  %v4210_v26 = vld [vmem:[%s5401_s0] sm:$0xff]   ;;  %v3583_v55 = vld [vmem:[%s5400_s1 + $0x8] sm:$0xff]   ;;  %v3590_v57 = vld [vmem:[%s5401_s0 + $0x10] sm:$0xff]  }
   0x8   :  { %v3582_v49 = vld [vmem:[%s5400_s1] sm:$0xff]   ;;  %v3588_v56 = vld [vmem:[%s5401_s0 + $0x8] sm:$0xff]   ;;  %v3584_v58 = vld [vmem:[%s5400_s1 + $0x10] sm:$0xff]  }
   0x9   :  { %3191 = vmatpush3.bf16.msra.mxu0 %v3581_v13  ;;  %v3591_v59 = vld [vmem:[%s5401_s0 + $0x18] sm:$0xff]   ;;  %v3593_v60 = vld [vmem:[%s5401_s0 + $0x20] sm:$0xff]   ;;  %v3594_v62 = vld [vmem:[%s5401_s0 + $0x28] sm:$0xff]  }
   0xa   :  { %3209 = vmatmul.mubr.msk.bf16.vlgmr.msra.gmra.mrb[0].mxu1 %vm107_vm1, %v175_v11  ;;  %3246 = vmatprep.subr.bf16.mxu0 %v4083_v1  ;;  %v3585_v61 = vld [vmem:[%s5400_s1 + $0x18] sm:$0xff]   ;;  %v3596_v63 = vld [vmem:[%s5401_s0 + $0x30] sm:$0xff]   ;;  %v3586_v0 = vld [vmem:[%s5400_s1 + $0x20] sm:$0xff]  }
   0xb   :  { %3212 = vmatprep.mubr.msk.bf16.mxu1 %vm107_vm1, %v176_v12  ;;  %v3597_v2 = vld [vmem:[%s5401_s0 + $0x38] sm:$0xff]   ;;  %v3599_v3 = vld [vmem:[%s5401_s0 + $0x40] sm:$0xff]   ;;  %v3589_v4 = vld [vmem:[%s5400_s1 + $0x28] sm:$0xff]  }
   0xc   :  { %3193 = vmatmul.mubr.msk.bf16.vlgmr.msra.gmra.mrb[0].mxu0 %vm107_vm1, %v88_v16  ;;  %v3600_v5 = vld [vmem:[%s5401_s0 + $0x48] sm:$0xff]   ;;  %v3601_v6 = vld [vmem:[%s5401_s0 + $0x50] sm:$0xff]   ;;  %v3602_v8 = vld [vmem:[%s5401_s0 + $0x58] sm:$0xff]  }
   0xd   :  { %3196 = vmatprep.mubr.msk.bf16.mxu0 %vm4084_vm0, %v4083_v1  ;;  %v3592_v7 = vld [vmem:[%s5400_s1 + $0x30] sm:$0xff]   ;;  %v3595_v9 = vld [vmem:[%s5400_s1 + $0x38] sm:$0xff]   ;;  %v3598_v10 = vld [vmem:[%s5400_s1 + $0x40] sm:$0xff]  }
   0xe   :  { %v3603_v11 = vld [vmem:[%s5398_s4 + $0x10] sm:$0xff]   ;;  %v3604_v12 = vld [vmem:[%s5398_s4 + $0x18] sm:$0xff]  }
   0xf   :  { %v4328_v13 = vld [vmem:[%s5396_s5 + $0x10] sm:$0xff]  }
  0x12   :  { %3213 = vmatmul.mubr.msk.bf16.gmra.mrb[4].mxu1 %vm107_vm1, %v177_v19 }
  0x13   :  { %3222 = vmatprep.mubr.msk.bf16.mxu1 %vm334_vm2, %v4210_v26 }
  0x14   :  { %3197 = vmatmul.mubr.msk.bf16.gmra.mrb[4].mxu0 %vm107_vm1, %v89_v22 }
  0x15   :  { %3200 = vmatprep.mubr.msk.bf16.mxu0 %vm4084_vm0, %v4083_v1 }
  0x1c   :  { %3201 = vmatmul.mubr.msk.bf16.gmra.mrb[8].mxu0 %vm107_vm1, %v90_v25 }
  0x1d   :  { %3254 = vmatprep.mubr.msk.bf16.mxu0 %vm4084_vm0, %v4083_v1 }
  0xdd   :  { %v3210_v27 = vpop.f32.mrb[0].mxu1 }
  0xde   :  { %v240_v28 = vpop.f32.mrb[1].mxu1 }
  0xdf   :  { %v3211_v29 = vpop.f32.mrb[2].mxu1  ;;  %v151_v33 = vpop.f32.mrb[0].mxu0 }
  0xe0   :  { %v501_v30 = vpack.c.bf16 %v3211_v29, %v3210_v27  ;;  %v243_v31 = vpop.f32.mrb[3].mxu1  ;;  %v3194_v34 = vpop.f32.mrb[1].mxu0 }
  0xe1   :  { %v500_v32 = vpack.c.bf16 %v243_v31, %v240_v28  ;;  %v154_v35 = vpop.f32.mrb[2].mxu0 }
  0xe2   :  { %v271_v36 = vpack.c.bf16 %v154_v35, %v151_v33  ;;  %v3195_v37 = vpop.f32.mrb[3].mxu0 }
  0xe3   :  { %3247 = vmatpush3.bf16.msra.mxu0 %v500_v32 }
  0xe4   :  { %3248 = vmatprep.subr.bf16.mxu0 %v4083_v1  ;;  %3216 = vmatprep.subr.bf16.mxu1 %v271_v36 }
  0xe5   :  { %v3214_v38 = vpop.f32.mrb[4].mxu1  ;;  %3217 = vmatpush3.bf16.msra.mxu1 %v271_v36 }
  0xe6   :  { %v256_v39 = vpop.f32.mrb[5].mxu1 }
  0xe7   :  { %v3215_v40 = vpop.f32.mrb[6].mxu1  ;;  %3249 = vmatpush3.bf16.msra.mxu0 %v501_v30  ;;  %v159_v44 = vpop.f32.mrb[4].mxu0 }
  0xe8   :  { %v503_v41 = vpack.c.bf16 %v3215_v40, %v3214_v38  ;;  %v259_v42 = vpop.f32.mrb[7].mxu1  ;;  %3250 = vmatprep.subr.bf16.mxu0 %v4083_v1  ;;  %v3198_v45 = vpop.f32.mrb[5].mxu0 }
  0xe9   :  { %v502_v43 = vpack.c.bf16 %v259_v42, %v256_v39  ;;  %v162_v46 = vpop.f32.mrb[6].mxu0 }
  0xea   :  { %v272_v47 = vpack.c.bf16 %v162_v46, %v159_v44  ;;  %v3199_v48 = vpop.f32.mrb[7].mxu0 }
  0xeb   :  { %3251 = vmatpush3.bf16.msra.mxu0 %v502_v43 }
  0xec   :  { %3252 = vmatprep.subr.bf16.mxu0 %v4083_v1  ;;  %3218 = vmatprep.subr.bf16.mxu1 %v272_v47 }
  0xed   :  { %3219 = vmatpush3.bf16.msra.mxu1 %v272_v47 }
  0xef   :  { %3253 = vmatpush3.bf16.msra.mxu0 %v503_v41  ;;  %v167_v50 = vpop.f32.mrb[8].mxu0 }
  0xf0   :  { %v3202_v51 = vpop.f32.mrb[9].mxu0 }
  0xf1   :  { %v170_v52 = vpop.f32.mrb[10].mxu0 }
  0xf2   :  { %3255 = vmatmul.mubr.msk.bf16.vlgmr.msra.gmra.mrb[12].mxu0 %vm549_vm3, %v3582_v49  ;;  %v273_v53 = vpack.c.bf16 %v170_v52, %v167_v50  ;;  %v3203_v54 = vpop.f32.mrb[11].mxu0 }
  0xf3   :  { %3258 = vmatprep.mubr.msk.bf16.mxu0 %vm4084_vm0, %v4083_v1 }
  0xf4   :  { %3220 = vmatprep.subr.bf16.mxu1 %v273_v53 }
  0xf5   :  { %3221 = vmatpush3.bf16.msra.mxu1 %v273_v53 }
  0xf6   :  { %3290 = vmatprep.subr.bf16.mxu1 %v4083_v1 }
  0xf8   :  { %3223 = vmatmul.mubr.msk.bf16.vlgmr.msra.gmra.mrb[8].mxu1 %vm334_vm2, %v3588_v56 }
  0xf9   :  { %3226 = vmatprep.mubr.msk.bf16.mxu1 %vm334_vm2, %v3590_v57  ;;  %3291 = vmatpush3.bf16.msra.mxu1 %v3603_v11 }
  0xfa   :  { %3259 = vmatmul.mubr.msk.bf16.gmra.mrb[16].mxu0 %vm549_vm3, %v3583_v55  ;;  %3292 = vmatprep.subr.bf16.mxu1 %v4083_v1 }
  0xfb   :  { %3262 = vmatprep.mubr.msk.bf16.mxu0 %vm4084_vm0, %v4083_v1 }
  0xfd   :  { %3293 = vmatpush3.bf16.msra.mxu1 %v3604_v12 }
  0xfe   :  { %3306 = vmatprep.subr.bf16.mxu1 %v4328_v13 }
 0x100   :  { %3227 = vmatmul.mubr.msk.bf16.gmra.mrb[12].mxu1 %vm334_vm2, %v3591_v59 }
 0x101   :  { %3230 = vmatprep.mubr.msk.bf16.mxu1 %vm334_vm2, %v3593_v60 }
 0x102   :  { %3263 = vmatmul.mubr.msk.bf16.gmra.mrb[20].mxu0 %vm549_vm3, %v3584_v58 }
 0x103   :  { %3266 = vmatprep.mubr.msk.bf16.mxu0 %vm4084_vm0, %v4083_v1 }
 0x108   :  { %3231 = vmatmul.mubr.msk.bf16.gmra.mrb[16].mxu1 %vm334_vm2, %v3594_v62 }
 0x109   :  { %3234 = vmatprep.mubr.msk.bf16.mxu1 %vm334_vm2, %v3596_v63 }
 0x10a   :  { %3267 = vmatmul.mubr.msk.bf16.gmra.mrb[24].mxu0 %vm549_vm3, %v3585_v61 }
 0x10b   :  { %3270 = vmatprep.mubr.msk.bf16.mxu0 %vm4084_vm0, %v4083_v1 }
 0x110   :  { %3235 = vmatmul.mubr.msk.bf16.gmra.mrb[20].mxu1 %vm334_vm2, %v3597_v2 }
 0x111   :  { %3238 = vmatprep.mubr.msk.bf16.mxu1 %vm334_vm2, %v3599_v3 }
 0x112   :  { %3271 = vmatmul.mubr.msk.bf16.gmra.mrb[28].mxu0 %vm549_vm3, %v3586_v0 }
 0x113   :  { %3274 = vmatprep.mubr.msk.bf16.mxu0 %vm4084_vm0, %v4083_v1 }
 0x118   :  { %3239 = vmatmul.mubr.msk.bf16.gmra.mrb[24].mxu1 %vm334_vm2, %v3600_v5 }
 0x119   :  { %3242 = vmatprep.mubr.msk.bf16.mxu1 %vm334_vm2, %v3601_v6 }
 0x11a   :  { %3275 = vmatmul.mubr.msk.bf16.gmra.mrb[32].mxu0 %vm549_vm3, %v3589_v4 }
 0x11b   :  { %3278 = vmatprep.mubr.msk.bf16.mxu0 %vm4084_vm0, %v4083_v1 }
 0x120   :  { %3243 = vmatmul.mubr.msk.bf16.gmra.mrb[28].mxu1 %vm334_vm2, %v3602_v8 }
 0x121   :  { %3294 = vmatprep.mubr.msk.bf16.mxu1 %vm4084_vm0, %v4083_v1 }
 0x122   :  { %3279 = vmatmul.mubr.msk.bf16.gmra.mrb[36].mxu0 %vm549_vm3, %v3592_v7 }
 0x123   :  { %3282 = vmatprep.mubr.msk.bf16.mxu0 %vm4084_vm0, %v4083_v1 }
 0x12a   :  { %3283 = vmatmul.mubr.msk.bf16.gmra.mrb[40].mxu0 %vm549_vm3, %v3595_v9 }
 0x12b   :  { %3286 = vmatprep.mubr.msk.bf16.mxu0 %vm4084_vm0, %v4083_v1 }
 0x132   :  { %3287 = vmatmul.mubr.msk.bf16.gmra.mrb[44].mxu0 %vm549_vm3, %v3598_v10 }
 0x133   :  { %3324 = vmatprep.mubr.msk.bf16.mxu0 %vm334_vm2, %v4210_v26 }
 0x1c5   :  { %v4331_v14 = vpop.f32.mrb[12].mxu0 }
 0x1c6   :  { %v2860_v15 = vmul.f32 -1.442695, %v4331_v14  ;;  %v3256_v16 = vpop.f32.mrb[13].mxu0 }
 0x1c7   :  { %v4334_v17 = vpop.f32.mrb[14].mxu0 }
 0x1c8   :  { %3615 = vpow2.f32 %v2860_v15  ;;  %v2861_v18 = vmul.f32 -1.442695, %v4334_v17  ;;  %v3257_v19 = vpop.f32.mrb[15].mxu0 }
 0x1ca   :  { %3617 = vpow2.f32 %v2861_v18 }
 0x1cb   :  { %v4339_v21 = vpop.f32.mrb[8].mxu1 }
 0x1cc   :  { %v2838_v24 = vmul.f32 -1.442695, %v4339_v21  ;;  %v4343_v25 = vpop.f32.mrb[9].mxu1 }
 0x1cd   :  { %v4337_v20 = vpop.f32.mrb[16].mxu0  ;;  %v2836_v27 = vmul.f32 -1.442695, %v4343_v25  ;;  %v4348_v28 = vpop.f32.mrb[10].mxu1 }
 0x1ce   :  { %v2862_v22 = vmul.f32 -1.442695, %v4337_v20  ;;  %v3260_v23 = vpop.f32.mrb[17].mxu0  ;;  %v2839_v31 = vmul.f32 -1.442695, %v4348_v28  ;;  %v4352_v32 = vpop.f32.mrb[11].mxu1 }
 0x1cf   :  { %v4345_v26 = vpop.f32.mrb[18].mxu0  ;;  %v2837_v34 = vmul.f32 -1.442695, %v4352_v32 }
 0x1d0   :  { %3619 = vpow2.f32 %v2862_v22  ;;  %v2863_v29 = vmul.f32 -1.442695, %v4345_v26  ;;  %v3261_v30 = vpop.f32.mrb[19].mxu0 }
 0x1d1   :  { %3621 = vpow2.f32 %v2838_v24 }
 0x1d2   :  { %v3616_v33 = vpop.eup %3615  ;;  %3623 = vpow2.f32 %v2863_v29 }
 0x1d3   :  { %v1006_v35 = vadd.f32 1.0, %v3616_v33  ;;  %3625 = vpow2.f32 %v2836_v27  ;;  %v4357_v39 = vpop.f32.mrb[12].mxu1 }
 0x1d4   :  { %v3618_v36 = vpop.eup %3617  ;;  %3627 = vpow2.f32 %v2839_v31  ;;  %v2842_v42 = vmul.f32 -1.442695, %v4357_v39  ;;  %v4361_v43 = vpop.f32.mrb[13].mxu1 }
 0x1d5   :  { %3629 = vrcp.f32 %v1006_v35  ;;  %v1007_v37 = vadd.f32 1.0, %v3618_v36  ;;  %v4355_v38 = vpop.f32.mrb[20].mxu0  ;;  %v2840_v45 = vmul.f32 -1.442695, %v4361_v43  ;;  %v4366_v46 = vpop.f32.mrb[14].mxu1 }
 0x1d6   :  { %v2864_v40 = vmul.f32 -1.442695, %v4355_v38  ;;  %v3264_v41 = vpop.f32.mrb[21].mxu0  ;;  %3631 = vpow2.f32 %v2837_v34  ;;  %v2843_v49 = vmul.f32 -1.442695, %v4366_v46  ;;  %v4370_v50 = vpop.f32.mrb[15].mxu1 }
 0x1d7   :  { %3633 = vrcp.f32 %v1007_v37  ;;  %v4363_v44 = vpop.f32.mrb[22].mxu0 }
 0x1d8   :  { %3635 = vpow2.f32 %v2864_v40  ;;  %v2865_v47 = vmul.f32 -1.442695, %v4363_v44  ;;  %v3265_v48 = vpop.f32.mrb[23].mxu0 }
 0x1d9   :  { %3637 = vpow2.f32 %v2842_v42  ;;  %v2841_v42 = vmul.f32 -1.442695, %v4370_v50 }
 0x1da   :  { %v3620_v51 = vpop.eup %3619  ;;  %3639 = vpow2.f32 %v2865_v47 }
 0x1db   :  { %v3622_v52 = vpop.eup %3621  ;;  %v1008_v53 = vadd.f32 1.0, %v3620_v51  ;;  %3641 = vpow2.f32 %v2840_v45  ;;  %v4372_v59 = vpop.f32.mrb[16].mxu1 }
 0x1dc   :  { %v3624_v54 = vpop.eup %3623  ;;  %v882_v55 = vadd.f32 1.0, %v3622_v52  ;;  %3643 = vpow2.f32 %v2843_v49  ;;  %v4377_v2 = vpop.f32.mrb[17].mxu1  ;;  %v4383_v6 = vadd.f32 %v4372_v59, %v4339_v21 }
 0x1dd   :  { %v3626_v56 = vpop.eup %3625  ;;  %3645 = vrcp.f32 %v1008_v53  ;;  %v1009_v57 = vadd.f32 1.0, %v3624_v54  ;;  %v635_v58 = vpop.f32.mrb[24].mxu0  ;;  %v4392_v12 = vadd.f32 %v4377_v2, %v4343_v25 }
 0x1de   :  { %v3628_v60 = vpop.eup %3627  ;;  %v4375_v61 = vadd.f32 %v635_v58, %v4331_v14  ;;  %v2866_v62 = vmul.f32 -1.442695, %v635_v58  ;;  %v3268_v63 = vpop.f32.mrb[25].mxu0  ;;  %3647 = vrcp.f32 %v882_v55  ;;  %v880_v0 = vadd.f32 1.0, %v3626_v56 }
 0x1df   :  { %v4379_v3 = vpop.eup %3629  ;;  %3649 = vrcp.f32 %v1009_v57  ;;  %v638_v4 = vpop.f32.mrb[26].mxu0  ;;  %v883_v5 = vadd.f32 1.0, %v3628_v60 }
 0x1e0   :  { %5440 = vst [vmem:[#allocation2_spill] sm:$0xff] %v4379_v3  ;;  %v4385_v7 = vpop.f32.mrb[18].mxu1  ;;  %v3632_v8 = vpop.eup %3631  ;;  %3651 = vpow2.f32 %v2866_v62  ;;  %v4388_v9 = vadd.f32 %v638_v4, %v4334_v17  ;;  %v2867_v10 = vmul.f32 -1.442695, %v638_v4 }
 0x1e1   :  { %v3269_v11 = vpop.f32.mrb[27].mxu0  ;;  %v4394_v14 = vpop.f32.mrb[19].mxu1  ;;  %3653 = vrcp.f32 %v880_v0  ;;  %v881_v16 = vadd.f32 1.0, %v3632_v8  ;;  %v4400_v18 = vadd.f32 %v4385_v7, %v4348_v28 }
 0x1e2   :  { %v4396_v15 = vpop.eup %3633  ;;  %3655 = vpow2.f32 %v2867_v10  ;;  %v4404_v17 = vadd.f32 %v4394_v14, %v4352_v32 }
 0x1e3   :  { %5441 = vst [vmem:[#allocation3_spill] sm:$0xff] %v4396_v15  ;;  %v3636_v19 = vpop.eup %3635  ;;  %3657 = vrcp.f32 %v883_v5  ;;  %v4408_v30 = vpop.f32.mrb[20].mxu1 }
 0x1e4   :  { %v3638_v21 = vpop.eup %3637  ;;  %v1010_v22 = vadd.f32 1.0, %v3636_v19  ;;  %3659 = vrcp.f32 %v881_v16  ;;  %v4413_v36 = vpop.f32.mrb[21].mxu1  ;;  %v4420_v45 = vadd.f32 %v4408_v30, %v4357_v39  ;;  %v2847_v19 = vmul.f32 -1.442695, %v4385_v7 }
 0x1e5   :  { %v3640_v24 = vpop.eup %3639  ;;  %v886_v25 = vadd.f32 1.0, %v3638_v21  ;;  %v643_v28 = vpop.f32.mrb[28].mxu0  ;;  %v4431_v52 = vadd.f32 %v4413_v36, %v4361_v43 }
 0x1e6   :  { %v3642_v27 = vpop.eup %3641  ;;  %3661 = vrcp.f32 %v1010_v22  ;;  %v1011_v29 = vadd.f32 1.0, %v3640_v24  ;;  %v4411_v33 = vadd.f32 %v643_v28, %v4337_v20  ;;  %v2868_v32 = vmul.f32 -1.442695, %v643_v28  ;;  %v3272_v34 = vpop.f32.mrb[29].mxu0 }
 0x1e7   :  { %v3644_v31 = vpop.eup %3643  ;;  %3663 = vrcp.f32 %v886_v25  ;;  %v884_v35 = vadd.f32 1.0, %v3642_v27  ;;  %v646_v40 = vpop.f32.mrb[30].mxu0  ;;  %v2845_v27 = vmul.f32 -1.442695, %v4394_v14 }
 0x1e8   :  { %v4415_v37 = vpop.eup %3645  ;;  %3665 = vrcp.f32 %v1011_v29  ;;  %v887_v41 = vadd.f32 1.0, %v3644_v31  ;;  %v4422_v47 = vpop.f32.mrb[22].mxu1  ;;  %v4427_v48 = vadd.f32 %v646_v40, %v4345_v26  ;;  %v2869_v49 = vmul.f32 -1.442695, %v646_v40 }
 0x1e9   :  { %5442 = vst [vmem:[#allocation4_spill] sm:$0xff] %v4415_v37  ;;  %v4424_v20 = vpop.eup %3647  ;;  %3667 = vpow2.f32 %v2868_v32  ;;  %v3273_v51 = vpop.f32.mrb[31].mxu0  ;;  %v4439_v39 = vadd.f32 %v4422_v47, %v4366_v46  ;;  %v2846_v26 = vmul.f32 -1.442695, %v4372_v59  ;;  %v2844_v59 = vmul.f32 -1.442695, %v4377_v2 }
 0x1ea   :  { %v4433_v53 = vpop.f32.mrb[23].mxu1  ;;  %v4435_v54 = vpop.eup %3649  ;;  %3669 = vrcp.f32 %v884_v35  ;;  %v2850_v31 = vmul.f32 -1.442695, %v4408_v30 }
 0x1eb   :  { %5443 = vst [vmem:[#allocation5_spill] sm:$0xff] %v4435_v54  ;;  %v3652_v55 = vpop.eup %3651  ;;  %3671 = vpow2.f32 %v2869_v49  ;;  %v4444_v56 = vadd.f32 %v4433_v53, %v4370_v50  ;;  %v4453_v0 = vpop.f32.mrb[24].mxu1 }
 0x1ec   :  { %v4448_v57 = vpop.eup %3653  ;;  %v1012_v58 = vadd.f32 1.0, %v3652_v55  ;;  %3673 = vrcp.f32 %v887_v41  ;;  %v4462_v10 = vadd.f32 %v4453_v0, %v4383_v6  ;;  %v4464_v11 = vpop.f32.mrb[25].mxu1 }
 0x1ed   :  { %v3656_v60 = vpop.eup %3655  ;;  %3675 = vpow2.f32 %v2841_v42  ;;  %v651_v63 = vpop.f32.mrb[32].mxu0  ;;  %v4471_v21 = vadd.f32 %v4392_v12, %v4464_v11 }
 0x1ee   :  { %v4450_v62 = vpop.eup %3657  ;;  %3677 = vrcp.f32 %v1012_v58  ;;  %v1013_v46 = vadd.f32 1.0, %v3656_v60  ;;  %v4458_v4 = vadd.f32 %v651_v63, %v4355_v38  ;;  %v2870_v5 = vmul.f32 -1.442695, %v651_v63  ;;  %v3276_v8 = vpop.f32.mrb[33].mxu0 }
 0x1ef   :  { %v4455_v50 = vpop.eup %3659  ;;  %3679 = vpow2.f32 %v2846_v26  ;;  %v654_v2 = vpop.f32.mrb[34].mxu0 }
 0x1f0   :  { %v4466_v16 = vpop.eup %3661  ;;  %3681 = vrcp.f32 %v1013_v46  ;;  %v4473_v38 = vpop.f32.mrb[26].mxu1  ;;  %v4478_v6 = vadd.f32 %v654_v2, %v4363_v44  ;;  %v2871_v24 = vmul.f32 -1.442695, %v654_v2 }
 0x1f1   :  { %5444 = vst [vmem:[#allocation6_spill] sm:$0xff] %v4466_v16  ;;  %v4475_v22 = vpop.eup %3663  ;;  %3683 = vpow2.f32 %v2870_v5  ;;  %v3277_v25 = vpop.f32.mrb[35].mxu0  ;;  %v4487_v7 = vadd.f32 %v4473_v38, %v4400_v18 }
 0x1f2   :  { %v4481_v29 = vpop.f32.mrb[27].mxu1  ;;  %v4483_v28 = vpop.eup %3665  ;;  %3685 = vpow2.f32 %v2844_v59 }
 0x1f3   :  { %5445 = vst [vmem:[#allocation7_spill] sm:$0xff] %v4483_v28  ;;  %v3668_v12 = vpop.eup %3667  ;;  %3687 = vpow2.f32 %v2871_v24  ;;  %v4492_v44 = vadd.f32 %v4404_v17, %v4481_v29  ;;  %v4502_v42 = vpop.f32.mrb[28].mxu1 }
 0x1f4   :  { %v4494_v32 = vpop.eup %3669  ;;  %v1014_v14 = vadd.f32 1.0, %v3668_v12  ;;  %3689 = vpow2.f32 %v2847_v19  ;;  %v4507_v58 = vpop.f32.mrb[29].mxu1  ;;  %v4513_v59 = vadd.f32 %v4502_v42, %v4420_v45 }
 0x1f5   :  { %v3672_v34 = vpop.eup %3671  ;;  %3691 = vpow2.f32 %v2845_v27  ;;  %v659_v41 = vpop.f32.mrb[36].mxu0 }
 0x1f6   :  { %v4500_v40 = vpop.eup %3673  ;;  %3693 = vrcp.f32 %v1014_v14  ;;  %v1015_v30 = vadd.f32 1.0, %v3672_v34  ;;  %v712_v51 = vadd.f32 %v4375_v61, %v659_v41  ;;  %v2872_v55 = vmul.f32 -1.442695, %v659_v41  ;;  %v3280_v26 = vpop.f32.mrb[37].mxu0 }
 0x1f7   :  { %v3676_v49 = vpop.eup %3675  ;;  %3695 = vpow2.f32 %v2850_v31  ;;  %v662_v46 = vpop.f32.mrb[38].mxu0  ;;  %v4524_v31 = vadd.f32 %v4431_v52, %v4507_v58 }
 0x1f8   :  { %v4509_v60 = vpop.eup %3677  ;;  %3697 = vrcp.f32 %v1015_v30  ;;  %v885_v63 = vadd.f32 1.0, %v3676_v49  ;;  %v4515_v5 = vpop.f32.mrb[30].mxu1  ;;  %v2830_v2 = vmul.f32 -0.33333334, %v712_v51  ;;  %v713_v61 = vadd.f32 %v4388_v9, %v662_v46 }
 0x1f9   :  { %5446 = vst [vmem:[#allocation8_spill] sm:$0xff] %v4509_v60  ;;  %v3680_v8 = vpop.eup %3679  ;;  %3699 = vpow2.f32 %v2872_v55  ;;  %v2873_v19 = vmul.f32 -1.442695, %v662_v46  ;;  %v3281_v24 = vpop.f32.mrb[39].mxu0  ;;  %v4528_v51 = vadd.f32 %v4515_v5, %v4439_v39 }
 0x1fa   :  { %v4518_v25 = vpop.f32.mrb[31].mxu1  ;;  %v4520_v27 = vpop.eup %3681  ;;  %3701 = vrcp.f32 %v885_v63  ;;  %v890_v12 = vadd.f32 1.0, %v3680_v8  ;;  %v778_v14 = vmul.f32 1.442695, %v2830_v2  ;;  %v2831_v34 = vmul.f32 -0.33333334, %v713_v61 }
 0x1fb   :  { %5447 = vst [vmem:[#allocation9_spill] sm:$0xff] %v4520_v27  ;;  %v3684_v45 = vpop.eup %3683  ;;  %3703 = vpow2.f32 %v2873_v19  ;;  %v4535_v39 = vadd.f32 %v4444_v56, %v4518_v25 }
 0x1fc   :  { %v3686_v30 = vpop.eup %3685  ;;  %v1016_v41 = vadd.f32 1.0, %v3684_v45  ;;  %3705 = vrcp.f32 %v890_v12  ;;  %v780_v49 = vmul.f32 1.442695, %v2831_v34 }
 0x1fd   :  { %v3688_v9 = vpop.eup %3687  ;;  %3707 = vpow2.f32 %v778_v14  ;;  %v667_v46 = vpop.f32.mrb[40].mxu0  ;;  %v888_v52 = vadd.f32 1.0, %v3686_v30 }
 0x1fe   :  { %v3690_v55 = vpop.eup %3689  ;;  %3709 = vrcp.f32 %v1016_v41  ;;  %v1017_v26 = vadd.f32 1.0, %v3688_v9  ;;  %v714_v8 = vadd.f32 %v4411_v33, %v667_v46  ;;  %v2874_v2 = vmul.f32 -1.442695, %v667_v46  ;;  %v3284_v61 = vpop.f32.mrb[41].mxu0 }
 0x1ff   :  { %v3692_v63 = vpop.eup %3691  ;;  %3711 = vpow2.f32 %v780_v49  ;;  %v670_v24 = vpop.f32.mrb[42].mxu0  ;;  %v891_v12 = vadd.f32 1.0, %v3690_v55 }
 0x200   :  { %v4531_v19 = vpop.eup %3693  ;;  %3713 = vrcp.f32 %v1017_v26  ;;  %v2832_v14 = vmul.f32 -0.33333334, %v714_v8  ;;  %v715_v34 = vadd.f32 %v4427_v48, %v670_v24  ;;  %v2875_v30 = vmul.f32 -1.442695, %v670_v24  ;;  %v3285_v41 = vpop.f32.mrb[43].mxu0 }
 0x201   :  { %5448 = vst [vmem:[#allocation10_spill] sm:$0xff] %v4531_v19  ;;  %v3696_v45 = vpop.eup %3695  ;;  %3715 = vpow2.f32 %v2874_v2 }
 0x202   :  { %v4538_v9 = vpop.eup %3697  ;;  %3717 = vrcp.f32 %v888_v52  ;;  %v782_v49 = vmul.f32 1.442695, %v2832_v14  ;;  %v2833_v46 = vmul.f32 -0.33333334, %v715_v34 }
 0x203   :  { %5449 = vst [vmem:[#allocation11_spill] sm:$0xff] %v4538_v9  ;;  %v3700_v33 = vpop.eup %3699  ;;  %3719 = vpow2.f32 %v2875_v30 }
 0x204   :  { %v4540_v26 = vpop.eup %3701  ;;  %v1018_v55 = vadd.f32 1.0, %v3700_v33  ;;  %3721 = vrcp.f32 %v891_v12  ;;  %v784_v2 = vmul.f32 1.442695, %v2833_v46  ;;  %v889_v33 = vadd.f32 1.0, %v3692_v63 }
 0x205   :  { %v3704_v8 = vpop.eup %3703  ;;  %3723 = vpow2.f32 %v782_v49  ;;  %v675_v14 = vpop.f32.mrb[44].mxu0  ;;  %v894_v12 = vadd.f32 1.0, %v3696_v45 }
 0x206   :  { %v4548_v61 = vpop.eup %3705  ;;  %3725 = vrcp.f32 %v1018_v55  ;;  %v1019_v24 = vadd.f32 1.0, %v3704_v8  ;;  %v716_v30 = vadd.f32 %v4458_v4, %v675_v14  ;;  %v2876_v41 = vmul.f32 -1.442695, %v675_v14  ;;  %v3288_v49 = vpop.f32.mrb[45].mxu0 }
 0x207   :  { %5450 = vst [vmem:[#allocation12_spill] sm:$0xff] %v4548_v61  ;;  %v3708_v34 = vpop.eup %3707  ;;  %3727 = vpow2.f32 %v784_v2  ;;  %v678_v52 = vpop.f32.mrb[46].mxu0 }
 0x208   :  { %v4553_v46 = vpop.eup %3709  ;;  %v790_v17 = vadd.f32 1.0, %v3708_v34  ;;  %3729 = vrcp.f32 %v1019_v24  ;;  %v2834_v23 = vmul.f32 -0.33333334, %v716_v30  ;;  %v717_v55 = vadd.f32 %v4478_v6, %v678_v52  ;;  %v3289_v8 = vpop.f32.mrb[47].mxu0 }
 0x209   :  { %5451 = vst [vmem:[#allocation13_spill] sm:$0xff] %v4553_v46  ;;  %v3712_v43 = vpop.eup %3711  ;;  %3731 = vpow2.f32 %v2876_v41  ;;  %v2877_v45 = vmul.f32 -1.442695, %v678_v52  ;;  %v2851_v52 = vmul.f32 -1.442695, %v4422_v47 }
 0x20a   :  { %v4556_v56 = vpop.eup %3713  ;;  %3733 = vrcp.f32 %v790_v17  ;;  %v791_v2 = vadd.f32 1.0, %v3712_v43  ;;  %v786_v14 = vmul.f32 1.442695, %v2834_v23  ;;  %v2835_v63 = vmul.f32 -0.33333334, %v717_v55 }
 0x20b   :  { %5452 = vst [vmem:[#allocation14_spill] sm:$0xff] %v4556_v56  ;;  %v3716_v4 = vpop.eup %3715  ;;  %3735 = vrcp.f32 %v889_v33 }
 0x20c   :  { %v4560_v24 = vpop.eup %3717  ;;  %3737 = vrcp.f32 %v791_v2  ;;  %v1020_v30 = vadd.f32 1.0, %v3716_v4  ;;  %v788_v6 = vmul.f32 1.442695, %v2835_v63  ;;  %v2848_v2 = vmul.f32 -1.442695, %v4413_v36 }
 0x20d   :  { %v3720_v41 = vpop.eup %3719  ;;  %3739 = vpow2.f32 %v786_v14  ;;  %v2824_v4 = vmul.f32 -0.33333334, %v4462_v10  ;;  %v2822_v36 = vmul.f32 -0.33333334, %v4471_v21 }
 0x20e   :  { %v4562_v49 = vpop.eup %3721  ;;  %3741 = vrcp.f32 %v1020_v30  ;;  %v1021_v17 = vadd.f32 1.0, %v3720_v41 }
 0x20f   :  { %5453 = vst [vmem:[#allocation15_spill] sm:$0xff] %v4562_v49  ;;  %v3724_v43 = vpop.eup %3723  ;;  %3743 = vrcp.f32 %v894_v12  ;;  %v736_v10 = vmul.f32 1.442695, %v2824_v4  ;;  %v732_v4 = vmul.f32 1.442695, %v2822_v36 }
 0x210   :  { %v4566_v33 = vpop.eup %3725  ;;  %v792_v55 = vadd.f32 1.0, %v3724_v43  ;;  %3745 = vrcp.f32 %v1021_v17 }
 0x211   :  { %5454 = vst [vmem:[#allocation16_spill] sm:$0xff] %v4566_v33  ;;  %v3728_v8 = vpop.eup %3727  ;;  %3747 = vpow2.f32 %v788_v6  ;;  %v2849_v6 = vmul.f32 -1.442695, %v4433_v53  ;;  %v3606_v53 = vld [vmem:[%s5396_s5 + $0x18] sm:$0xff]  }
 0x212   :  { %v4570_v14 = vpop.eup %3729  ;;  %3749 = vrcp.f32 %v792_v55  ;;  %v793_v63 = vadd.f32 1.0, %v3728_v8  ;;  %v2854_v8 = vmul.f32 -1.442695, %v4453_v0 }
 0x213   :  { %5455 = vst [vmem:[#allocation17_spill] sm:$0xff] %v4570_v14  ;;  %v3732_v30 = vpop.eup %3731  ;;  %3751 = vpow2.f32 %v2877_v45 }
 0x214   :  { %v3734_v41 = vpop.eup %3733  ;;  %3753 = vrcp.f32 %v793_v63  ;;  %v1022_v17 = vadd.f32 1.0, %v3732_v30  ;;  %v2825_v63 = vmul.f32 -0.33333334, %v4487_v7 }
 0x215   :  { %v4577_v43 = vpop.eup %3735  ;;  %3755 = vpow2.f32 %v2848_v2 }
 0x216   :  { %v3738_v55 = vpop.eup %3737  ;;  %3757 = vrcp.f32 %v1022_v17 }
 0x217   :  { %v3740_v47 = vpop.eup %3739  ;;  %3759 = vpow2.f32 %v2851_v52  ;;  %v4583_v30 = vpack.c.bf16 %v3738_v55, %v3734_v41  ;;  %v2852_v52 = vmul.f32 -1.442695, %v4464_v11  ;;  %v738_v41 = vmul.f32 1.442695, %v2825_v63 }
 0x218   :  { %v4588_v21 = vpop.eup %3741  ;;  %v794_v2 = vadd.f32 1.0, %v3740_v47  ;;  %3761 = vpow2.f32 %v2849_v6  ;;  %v2823_v6 = vmul.f32 -0.33333334, %v4492_v44  ;;  %v2855_v47 = vmul.f32 -1.442695, %v4473_v38 }
 0x219   :  { %5456 = vst [vmem:[#allocation18_spill] sm:$0xff] %v4588_v21  ;;  %v4590_v17 = vpop.eup %3743  ;;  %3763 = vpow2.f32 %v736_v10  ;;  %3295 = vmatmul.mubr.msk.bf16.vlgmr.msra.gmra.mrb[32].mxu1 %vm107_vm1, %v4583_v30  ;;  %v2826_v11 = vmul.f32 -0.33333334, %v4524_v31 }
 0x21a   :  { %5457 = vst [vmem:[#allocation19_spill] sm:$0xff] %v4590_v17  ;;  %v4595_v0 = vpop.eup %3745  ;;  %3765 = vrcp.f32 %v794_v2  ;;  %3298 = vmatprep.mubr.msk.bf16.mxu1 %vm4084_vm0, %v4083_v1  ;;  %3307 = vmatpush3.bf16.msra.mxu1 %v4328_v13 }
 0x21b   :  { %5458 = vst [vmem:[#allocation20_spill] sm:$0xff] %v4595_v0  ;;  %v3748_v7 = vpop.eup %3747  ;;  %3767 = vpow2.f32 %v2854_v8  ;;  %3308 = vmatprep.subr.bf16.mxu1 %v3606_v53  ;;  %v734_v8 = vmul.f32 1.442695, %v2823_v6  ;;  %v2853_v6 = vmul.f32 -1.442695, %v4481_v29 }
 0x21c   :  { %v3750_v36 = vpop.eup %3749  ;;  %v795_v10 = vadd.f32 1.0, %v3748_v7  ;;  %3769 = vpow2.f32 %v732_v4 }
 0x21d   :  { %v3752_v55 = vpop.eup %3751  ;;  %3771 = vpow2.f32 %v2852_v52 }
 0x21e   :  { %v3754_v2 = vpop.eup %3753  ;;  %3773 = vrcp.f32 %v795_v10  ;;  %v1023_v12 = vadd.f32 1.0, %v3752_v55  ;;  %3309 = vmatpush3.bf16.msra.mxu1 %v3606_v53 }
 0x21f   :  { %v3756_v13 = vpop.eup %3755  ;;  %3775 = vpow2.f32 %v738_v41  ;;  %v4604_v63 = vpack.c.bf16 %v3754_v2, %v3750_v36  ;;  %3348 = vmatprep.subr.bf16.mxu1 %v4083_v1  ;;  %v2828_v36 = vmul.f32 -0.33333334, %v4513_v59  ;;  %v2858_v59 = vmul.f32 -1.442695, %v4502_v42 }
 0x220   :  { %v4607_v44 = vpop.eup %3757  ;;  %3777 = vrcp.f32 %v1023_v12  ;;  %v892_v7 = vadd.f32 1.0, %v3756_v13 }
 0x221   :  { %5459 = vst [vmem:[#allocation21_spill] sm:$0xff] %v4604_v63  ;;  %5460 = vst [vmem:[#allocation22_spill] sm:$0xff] %v4607_v44  ;;  %v3760_v4 = vpop.eup %3759  ;;  %3779 = vpow2.f32 %v2855_v47  ;;  %3299 = vmatmul.mubr.msk.bf16.gmra.mrb[36].mxu1 %vm107_vm1, %v4604_v63 }
 0x222   :  { %v3762_v38 = vpop.eup %3761  ;;  %3781 = vrcp.f32 %v892_v7  ;;  %v895_v52 = vadd.f32 1.0, %v3760_v4  ;;  %3302 = vmatprep.mubr.msk.bf16.mxu1 %vm4084_vm0, %v4083_v1  ;;  %v744_v4 = vmul.f32 1.442695, %v2828_v36 }
 0x223   :  { %v3764_v53 = vpop.eup %3763  ;;  %v893_v41 = vadd.f32 1.0, %v3762_v38  ;;  %3783 = vpow2.f32 %v734_v8 }
 0x224   :  { %v3766_v12 = vpop.eup %3765  ;;  %3785 = vrcp.f32 %v895_v52  ;;  %v750_v10 = vadd.f32 1.0, %v3764_v53 }
 0x225   :  { %v3768_v55 = vpop.eup %3767  ;;  %3787 = vrcp.f32 %v893_v41 }
 0x226   :  { %v3770_v47 = vpop.eup %3769  ;;  %3789 = vrcp.f32 %v750_v10  ;;  %v898_v2 = vadd.f32 1.0, %v3768_v55  ;;  %v2829_v10 = vmul.f32 -0.33333334, %v4528_v51 }
 0x227   :  { %v3772_v13 = vpop.eup %3771  ;;  %v748_v7 = vadd.f32 1.0, %v3770_v47  ;;  %3791 = vpow2.f32 %v2853_v6  ;;  %v740_v6 = vmul.f32 1.442695, %v2826_v11  ;;  %v2856_v47 = vmul.f32 -1.442695, %v4507_v58 }
 0x228   :  { %v3774_v38 = vpop.eup %3773  ;;  %3793 = vrcp.f32 %v898_v2  ;;  %v896_v8 = vadd.f32 1.0, %v3772_v13  ;;  %v2827_v2 = vmul.f32 -0.33333334, %v4535_v39  ;;  %v746_v13 = vmul.f32 1.442695, %v2829_v10 }
 0x229   :  { %v3776_v29 = vpop.eup %3775  ;;  %3795 = vrcp.f32 %v748_v7  ;;  %v4617_v52 = vpack.c.bf16 %v3774_v38, %v3766_v12  ;;  %v2857_v10 = vmul.f32 -1.442695, %v4518_v25 }
 0x22a   :  { %v4619_v53 = vpop.eup %3777  ;;  %3797 = vrcp.f32 %v896_v8  ;;  %v751_v41 = vadd.f32 1.0, %v3776_v29  ;;  %v742_v39 = vmul.f32 1.442695, %v2827_v2 }
 0x22b   :  { %5461 = vst [vmem:[#allocation23_spill] sm:$0xff] %v4617_v52  ;;  %5462 = vst [vmem:[#allocation24_spill] sm:$0xff] %v4619_v53  ;;  %v3780_v55 = vpop.eup %3779  ;;  %3799 = vpow2.f32 %v744_v4  ;;  %3303 = vmatmul.mubr.msk.bf16.gmra.mrb[40].mxu1 %vm107_vm1, %v4617_v52  ;;  %v2859_v4 = vmul.f32 -1.442695, %v4515_v5 }
 0x22c   :  { %v4626_v36 = vpop.eup %3781  ;;  %3801 = vrcp.f32 %v751_v41  ;;  %v899_v42 = vadd.f32 1.0, %v3780_v55 }
 0x22d   :  { %5463 = vst [vmem:[#allocation25_spill] sm:$0xff] %v4626_v36  ;;  %v3784_v12 = vpop.eup %3783  ;;  %3803 = vpow2.f32 %v2858_v59 }
 0x22e   :  { %v4630_v51 = vpop.eup %3785  ;;  %3805 = vrcp.f32 %v899_v42  ;;  %v749_v11 = vadd.f32 1.0, %v3784_v12 }
 0x22f   :  { %5464 = vst [vmem:[#allocation26_spill] sm:$0xff] %v4630_v51  ;;  %v4632_v7 = vpop.eup %3787  ;;  %3807 = vpow2.f32 %v740_v6 }
 0x230   :  { %5465 = vst [vmem:[#allocation27_spill] sm:$0xff] %v4632_v7  ;;  %v3790_v8 = vpop.eup %3789  ;;  %3809 = vrcp.f32 %v749_v11 }
 0x231   :  { %v3792_v29 = vpop.eup %3791  ;;  %3811 = vpow2.f32 %v2856_v47 }
 0x232   :  { %v4639_v59 = vpop.eup %3793  ;;  %v897_v41 = vadd.f32 1.0, %v3792_v29  ;;  %3813 = vpow2.f32 %v746_v13 }
 0x233   :  { %5466 = vst [vmem:[#allocation28_spill] sm:$0xff] %v4639_v59  ;;  %v3796_v55 = vpop.eup %3795  ;;  %3815 = vpow2.f32 %v2859_v4 }
 0x234   :  { %v4642_v5 = vpop.eup %3797  ;;  %3817 = vrcp.f32 %v897_v41 }
 0x235   :  { %5467 = vst [vmem:[#allocation29_spill] sm:$0xff] %v4642_v5  ;;  %v3800_v6 = vpop.eup %3799  ;;  %3819 = vpow2.f32 %v742_v39 }
 0x236   :  { %v3802_v42 = vpop.eup %3801  ;;  %3821 = vpow2.f32 %v2857_v10  ;;  %v754_v2 = vadd.f32 1.0, %v3800_v6 }
 0x237   :  { %v3804_v12 = vpop.eup %3803  ;;  %v4644_v11 = vpack.c.bf16 %v3802_v42, %v3790_v8 }
 0x238   :  { %v4646_v47 = vpop.eup %3805  ;;  %v902_v29 = vadd.f32 1.0, %v3804_v12  ;;  %3823 = vrcp.f32 %v754_v2 }
 0x239   :  { %5468 = vst [vmem:[#allocation30_spill] sm:$0xff] %v4646_v47  ;;  %v3808_v31 = vpop.eup %3807 }
 0x23a   :  { %v3810_v13 = vpop.eup %3809  ;;  %v752_v4 = vadd.f32 1.0, %v3808_v31  ;;  %3825 = vrcp.f32 %v902_v29 }
 0x23b   :  { %v3812_v34 = vpop.eup %3811  ;;  %v4650_v38 = vpack.c.bf16 %v3810_v13, %v3796_v55 }
 0x23c   :  { %v3814_v41 = vpop.eup %3813  ;;  %v900_v10 = vadd.f32 1.0, %v3812_v34  ;;  %3827 = vrcp.f32 %v752_v4 }
 0x23d   :  { %v3816_v39 = vpop.eup %3815  ;;  %v755_v8 = vadd.f32 1.0, %v3814_v41  ;;  %3310 = vmatprep.mubr.msk.bf16.mxu1 %vm107_vm1, %v4650_v38 }
 0x23e   :  { %v4654_v6 = vpop.eup %3817  ;;  %v903_v42 = vadd.f32 1.0, %v3816_v39  ;;  %3311 = vmatmul.mubr.msk.bf16.vlgmr.msra.gmra.mrb[44].mxu1 %vm107_vm1, %v4644_v11 }
 0x23f   :  { %5469 = vst [vmem:[#allocation31_spill] sm:$0xff] %v4654_v6  ;;  %v3820_v31 = vpop.eup %3819  ;;  %3829 = vrcp.f32 %v755_v8 }
 0x240   :  { %v3822_v12 = vpop.eup %3821  ;;  %3831 = vrcp.f32 %v903_v42  ;;  %v753_v2 = vadd.f32 1.0, %v3820_v31 }
 0x241   :  { %3833 = vrcp.f32 %v900_v10  ;;  %v901_v34 = vadd.f32 1.0, %v3822_v12 }
 0x242   :  { %3835 = vrcp.f32 %v753_v2  ;;  %v3824_v29 = vpop.eup %3823 }
 0x243   :  { %3837 = vrcp.f32 %v901_v34 }
 0x244   :  { %v4660_v13 = vpop.eup %3825 }
 0x245   :  { %5470 = vst [vmem:[#allocation32_spill] sm:$0xff] %v4660_v13 }
 0x246   :  { %v3828_v4 = vpop.eup %3827 }
 0x249   :  { %v3830_v41 = vpop.eup %3829 }
 0x24a   :  { %v4662_v39 = vpop.eup %3831  ;;  %v4664_v25 = vpack.c.bf16 %v3830_v41, %v3824_v29 }
 0x24b   :  { %5471 = vst [vmem:[#allocation33_spill] sm:$0xff] %v4662_v39  ;;  %v4666_v8 = vpop.eup %3833 }
 0x24c   :  { %5472 = vst [vmem:[#allocation34_spill] sm:$0xff] %v4666_v8  ;;  %v3836_v42 = vpop.eup %3835 }
 0x24d   :  { %v4670_v31 = vpop.eup %3837  ;;  %v4672_v10 = vpack.c.bf16 %v3836_v42, %v3828_v4 }
 0x24e   :  { %5473 = vst [vmem:[#allocation35_spill] sm:$0xff] %v4670_v31 }
 0x24f   :  { %3314 = vmatprep.mubr.msk.bf16.mxu1 %vm107_vm1, %v4672_v10 }
 0x250   :  { %3315 = vmatmul.mubr.msk.bf16.gmra.mrb[48].mxu1 %vm107_vm1, %v4664_v25 }
 0x251   :  { %3356 = vmatprep.mubr.msk.bf16.mxu1 %vm4084_vm0, %v4083_v1 }
 0x2ec   :  { %v1156_v2 = vpop.f32.mrb[32].mxu1 }
 0x2ed   :  { %v3296_v34 = vpop.f32.mrb[33].mxu1 }
 0x2ee   :  { %v1159_v29 = vpop.f32.mrb[34].mxu1  ;;  %v4067_v34 = vld [vmem:[%s5401_s0 + $0x28] sm:$0xff]  }
 0x2ef   :  { %v1273_v41 = vpack.c.bf16 %v1159_v29, %v1156_v2  ;;  %v3297_v55 = vpop.f32.mrb[35].mxu1  ;;  %v4068_v29 = vld [vmem:[%s5401_s0 + $0x30] sm:$0xff]  }
 0x2f0   :  { %v4063_v55 = vld [vmem:[%s5401_s0 + $0x8] sm:$0xff]  }
 0x2f1   :  { %3318 = vmatprep.subr.bf16.mxu0 %v1273_v41 }
 0x2f2   :  { %3319 = vmatpush3.bf16.msra.mxu0 %v1273_v41  ;;  %v4069_v41 = vld [vmem:[%s5401_s0 + $0x38] sm:$0xff]  }
 0x2f4   :  { %v1164_v4 = vpop.f32.mrb[36].mxu1 }
 0x2f5   :  { %v3300_v42 = vpop.f32.mrb[37].mxu1 }
 0x2f6   :  { %v1167_v58 = vpop.f32.mrb[38].mxu1 }
 0x2f7   :  { %v1274_v12 = vpack.c.bf16 %v1167_v58, %v1164_v4  ;;  %v3301_v23 = vpop.f32.mrb[39].mxu1  ;;  %v4064_v58 = vld [vmem:[%s5401_s0 + $0x10] sm:$0xff]   ;;  %v4070_v4 = vld [vmem:[%s5401_s0 + $0x40] sm:$0xff]  }
 0x2f9   :  { %3320 = vmatprep.subr.bf16.mxu0 %v1274_v12 }
 0x2fa   :  { %3321 = vmatpush3.bf16.msra.mxu0 %v1274_v12 }
 0x2fe   :  { %v1172_v45 = vpop.f32.mrb[40].mxu1 }
 0x2ff   :  { %v3304_v48 = vpop.f32.mrb[41].mxu1 }
 0x300   :  { %v1175_v18 = vpop.f32.mrb[42].mxu1  ;;  %v4065_v48 = vld [vmem:[%s5401_s0 + $0x18] sm:$0xff]  }
 0x301   :  { %v1275_v35 = vpack.c.bf16 %v1175_v18, %v1172_v45  ;;  %v3305_v44 = vpop.f32.mrb[43].mxu1 }
 0x303   :  { %3322 = vmatprep.subr.bf16.mxu0 %v1275_v35 }
 0x304   :  { %3323 = vmatpush3.bf16.msra.mxu0 %v1275_v35  ;;  %v4066_v35 = vld [vmem:[%s5401_s0 + $0x20] sm:$0xff]  }
 0x307   :  { %3325 = vmatmul.mubr.msk.bf16.vlgmr.msra.gmra.mrb[48].mxu0 %vm334_vm2, %v4063_v55 }
 0x308   :  { %3328 = vmatprep.mubr.msk.bf16.mxu0 %vm334_vm2, %v4064_v58 }
 0x30f   :  { %3329 = vmatmul.mubr.msk.bf16.gmra.mrb[52].mxu0 %vm334_vm2, %v4065_v48 }
 0x310   :  { %3332 = vmatprep.mubr.msk.bf16.mxu0 %vm334_vm2, %v4066_v35 }
 0x311   :  { %v3312_v18 = vpop.f32.mrb[44].mxu1 }
 0x312   :  { %v1242_v23 = vpop.f32.mrb[45].mxu1 }
 0x313   :  { %v3313_v45 = vpop.f32.mrb[46].mxu1 }
 0x314   :  { %v1406_v44 = vpack.c.bf16 %v3313_v45, %v3312_v18  ;;  %v1245_v12 = vpop.f32.mrb[47].mxu1  ;;  %v4072_v45 = vld [vmem:[%s5401_s0 + $0x50] sm:$0xff]  }
 0x315   :  { %v1405_v2 = vpack.c.bf16 %v1245_v12, %v1242_v23  ;;  %v4071_v23 = vld [vmem:[%s5401_s0 + $0x48] sm:$0xff]   ;;  %v4074_v12 = vld [vmem:[%s5400_s1] sm:$0xff]  }
 0x317   :  { %3349 = vmatpush3.bf16.msra.mxu1 %v1405_v2  ;;  %3333 = vmatmul.mubr.msk.bf16.gmra.mrb[56].mxu0 %vm334_vm2, %v4067_v34  ;;  %v4075_v2 = vld [vmem:[%s5400_s1 + $0x8] sm:$0xff]   ;;  %v4076_v34 = vld [vmem:[%s5400_s1 + $0x10] sm:$0xff]  }
 0x318   :  { %3350 = vmatprep.subr.bf16.mxu1 %v4083_v1  ;;  %3336 = vmatprep.mubr.msk.bf16.mxu0 %vm334_vm2, %v4068_v29  ;;  %v4077_v29 = vld [vmem:[%s5400_s1 + $0x18] sm:$0xff]  }
 0x31b   :  { %3351 = vmatpush3.bf16.msra.mxu1 %v1406_v44  ;;  %v4073_v44 = vld [vmem:[%s5401_s0 + $0x58] sm:$0xff]  }
 0x31c   :  { %3352 = vmatprep.subr.bf16.mxu1 %v4083_v1 }
 0x31f   :  { %3337 = vmatmul.mubr.msk.bf16.gmra.mrb[60].mxu0 %vm334_vm2, %v4069_v41  ;;  %v4078_v41 = vld [vmem:[%s5400_s1 + $0x20] sm:$0xff]  }
 0x320   :  { %3340 = vmatprep.mubr.msk.bf16.mxu0 %vm334_vm2, %v4070_v4  ;;  %v4079_v4 = vld [vmem:[%s5400_s1 + $0x28] sm:$0xff]  }
 0x323   :  { %v3316_v42 = vpop.f32.mrb[48].mxu1 }
 0x324   :  { %v1258_v55 = vpop.f32.mrb[49].mxu1 }
 0x325   :  { %v3317_v58 = vpop.f32.mrb[50].mxu1 }
 0x326   :  { %v1408_v48 = vpack.c.bf16 %v3317_v58, %v3316_v42  ;;  %v1261_v35 = vpop.f32.mrb[51].mxu1  ;;  %v4080_v42 = vld [vmem:[%s5400_s1 + $0x30] sm:$0xff]   ;;  %v4082_v58 = vld [vmem:[%s5400_s1 + $0x40] sm:$0xff]  }
 0x327   :  { %v1407_v18 = vpack.c.bf16 %v1261_v35, %v1258_v55  ;;  %3341 = vmatmul.mubr.msk.bf16.gmra.mrb[64].mxu0 %vm334_vm2, %v4071_v23  ;;  %v4081_v55 = vld [vmem:[%s5400_s1 + $0x38] sm:$0xff]  }
 0x328   :  { %3344 = vmatprep.mubr.msk.bf16.mxu0 %vm334_vm2, %v4072_v45  ;;  %v3608_v35 = vld [vmem:[%s5402_s6 + $0x18] sm:$0xff]  }
 0x329   :  { %3353 = vmatpush3.bf16.msra.mxu1 %v1407_v18 }
 0x32a   :  { %3354 = vmatprep.subr.bf16.mxu1 %v4083_v1 }
 0x32d   :  { %3355 = vmatpush3.bf16.msra.mxu1 %v1408_v48  ;;  %v3607_v48 = vld [vmem:[%s5402_s6 + $0x10] sm:$0xff]  }
 0x32e   :  { %3392 = vmatprep.subr.bf16.mxu0 %v3607_v48 }
 0x32f   :  { %3345 = vmatmul.mubr.msk.bf16.gmra.mrb[68].mxu0 %vm334_vm2, %v4073_v44  ;;  %v3610_v44 = vld [vmem:[%s5403_s7 + $0x18] sm:$0xff]  }
 0x330   :  { %3357 = vmatmul.mubr.msk.bf16.vlgmr.msra.gmra.mrb[52].mxu1 %vm549_vm3, %v4074_v12  ;;  %3393 = vmatpush3.bf16.msra.mxu0 %v3607_v48 }
 0x331   :  { %3360 = vmatprep.mubr.msk.bf16.mxu1 %vm4084_vm0, %v4083_v1  ;;  %3394 = vmatprep.subr.bf16.mxu0 %v3608_v35 }
 0x334   :  { %3395 = vmatpush3.bf16.msra.mxu0 %v3608_v35 }
 0x338   :  { %3361 = vmatmul.mubr.msk.bf16.gmra.mrb[56].mxu1 %vm549_vm3, %v4075_v2 }
 0x339   :  { %3364 = vmatprep.mubr.msk.bf16.mxu1 %vm4084_vm0, %v4083_v1 }
 0x340   :  { %3365 = vmatmul.mubr.msk.bf16.gmra.mrb[60].mxu1 %vm549_vm3, %v4076_v34 }
 0x341   :  { %3368 = vmatprep.mubr.msk.bf16.mxu1 %vm4084_vm0, %v4083_v1 }
 0x348   :  { %3369 = vmatmul.mubr.msk.bf16.gmra.mrb[64].mxu1 %vm549_vm3, %v4077_v29 }
 0x349   :  { %3372 = vmatprep.mubr.msk.bf16.mxu1 %vm4084_vm0, %v4083_v1 }
 0x350   :  { %3373 = vmatmul.mubr.msk.bf16.gmra.mrb[68].mxu1 %vm549_vm3, %v4078_v41 }
 0x351   :  { %3376 = vmatprep.mubr.msk.bf16.mxu1 %vm4084_vm0, %v4083_v1 }
 0x358   :  { %3377 = vmatmul.mubr.msk.bf16.gmra.mrb[72].mxu1 %vm549_vm3, %v4079_v4 }
 0x359   :  { %3380 = vmatprep.mubr.msk.bf16.mxu1 %vm4084_vm0, %v4083_v1 }
 0x360   :  { %3381 = vmatmul.mubr.msk.bf16.gmra.mrb[76].mxu1 %vm549_vm3, %v4080_v42 }
 0x361   :  { %3384 = vmatprep.mubr.msk.bf16.mxu1 %vm4084_vm0, %v4083_v1 }
 0x368   :  { %3385 = vmatmul.mubr.msk.bf16.gmra.mrb[80].mxu1 %vm549_vm3, %v4081_v55 }
 0x369   :  { %3388 = vmatprep.mubr.msk.bf16.mxu1 %vm4084_vm0, %v4083_v1  ;;  %v3609_v1 = vld [vmem:[%s5403_s7 + $0x10] sm:$0xff]  }
 0x36a   :  { %3464 = vmatprep.subr.bf16.mxu1 %v3609_v1 }
 0x36b   :  { %3465 = vmatpush3.bf16.msra.mxu1 %v3609_v1 }
 0x36c   :  { %3466 = vmatprep.subr.bf16.mxu1 %v3610_v44 }
 0x36f   :  { %3467 = vmatpush3.bf16.msra.mxu1 %v3610_v44  ;;  %v4796_v44 = vld [vmem:[%s5402_s6] sm:$0xff]  }
 0x370   :  { %3389 = vmatmul.mubr.msk.bf16.gmra.mrb[84].mxu1 %vm549_vm3, %v4082_v58  ;;  %3428 = vmatprep.subr.bf16.mxu0 %v4796_v44 }
 0x3da   :  { %v3326_v18 = vpop.f32.mrb[48].mxu0 }
 0x3db   :  { %v2934_v23 = vmul.f32 -1.442695, %v3326_v18  ;;  %v1310_v45 = vpop.f32.mrb[49].mxu0 }
 0x3dc   :  { %v2932_v12 = vmul.f32 -1.442695, %v1310_v45  ;;  %v3327_v2 = vpop.f32.mrb[50].mxu0 }
 0x3dd   :  { %3839 = vpow2.f32 %v2934_v23  ;;  %v2935_v34 = vmul.f32 -1.442695, %v3327_v2  ;;  %v1313_v29 = vpop.f32.mrb[51].mxu0 }
 0x3de   :  { %3841 = vpow2.f32 %v2932_v12  ;;  %v2933_v41 = vmul.f32 -1.442695, %v1313_v29 }
 0x3df   :  { %3843 = vpow2.f32 %v2935_v34 }
 0x3e0   :  { %3845 = vpow2.f32 %v2933_v41 }
 0x3e2   :  { %v3330_v4 = vpop.f32.mrb[52].mxu0 }
 0x3e3   :  { %v2938_v42 = vmul.f32 -1.442695, %v3330_v4  ;;  %v1326_v55 = vpop.f32.mrb[53].mxu0 }
 0x3e4   :  { %v2936_v58 = vmul.f32 -1.442695, %v1326_v55  ;;  %v3331_v48 = vpop.f32.mrb[54].mxu0 }
 0x3e5   :  { %3847 = vpow2.f32 %v2938_v42  ;;  %v2939_v35 = vmul.f32 -1.442695, %v3331_v48  ;;  %v1329_v1 = vpop.f32.mrb[55].mxu0 }
 0x3e6   :  { %3849 = vpow2.f32 %v2936_v58  ;;  %v2937_v53 = vmul.f32 -1.442695, %v1329_v1 }
 0x3e7   :  { %v3840_v21 = vpop.eup %3839  ;;  %3851 = vpow2.f32 %v2939_v35 }
 0x3e8   :  { %v3842_v23 = vpop.eup %3841  ;;  %v1714_v0 = vadd.f32 1.0, %v3840_v21  ;;  %3853 = vpow2.f32 %v2937_v53 }
 0x3e9   :  { %v3844_v12 = vpop.eup %3843  ;;  %v1712_v34 = vadd.f32 1.0, %v3842_v23 }
 0x3ea   :  { %v3846_v41 = vpop.eup %3845  ;;  %3855 = vrcp.f32 %v1714_v0  ;;  %v1715_v33 = vadd.f32 1.0, %v3844_v12  ;;  %v3334_v42 = vpop.f32.mrb[56].mxu0 }
 0x3eb   :  { %3857 = vrcp.f32 %v1712_v34  ;;  %v1713_v58 = vadd.f32 1.0, %v3846_v41  ;;  %v1516_v14 = vadd.f32 %v3334_v42, %v3326_v18  ;;  %v2942_v35 = vmul.f32 -1.442695, %v3334_v42  ;;  %v1342_v46 = vpop.f32.mrb[57].mxu0 }
 0x3ec   :  { %3859 = vrcp.f32 %v1715_v33  ;;  %v1514_v21 = vadd.f32 %v1342_v46, %v1310_v45  ;;  %v2940_v53 = vmul.f32 -1.442695, %v1342_v46  ;;  %v3335_v56 = vpop.f32.mrb[58].mxu0 }
 0x3ed   :  { %3861 = vrcp.f32 %v1713_v58  ;;  %v4799_v19 = vadd.f32 %v3335_v56, %v3327_v2  ;;  %v2943_v9 = vmul.f32 -1.442695, %v3335_v56  ;;  %v1345_v23 = vpop.f32.mrb[59].mxu0 }
 0x3ee   :  { %3863 = vpow2.f32 %v2942_v35  ;;  %v4801_v0 = vadd.f32 %v1345_v23, %v1313_v29  ;;  %v2941_v12 = vmul.f32 -1.442695, %v1345_v23 }
 0x3ef   :  { %v3848_v13 = vpop.eup %3847  ;;  %3865 = vpow2.f32 %v2940_v53 }
 0x3f0   :  { %v3850_v34 = vpop.eup %3849  ;;  %v1718_v41 = vadd.f32 1.0, %v3848_v13  ;;  %3867 = vpow2.f32 %v2943_v9 }
 0x3f1   :  { %v3852_v18 = vpop.eup %3851  ;;  %v1716_v42 = vadd.f32 1.0, %v3850_v34  ;;  %3869 = vpow2.f32 %v2941_v12 }
 0x3f2   :  { %v3854_v33 = vpop.eup %3853  ;;  %3871 = vrcp.f32 %v1718_v41  ;;  %v1719_v46 = vadd.f32 1.0, %v3852_v18  ;;  %v3338_v45 = vpop.f32.mrb[60].mxu0 }
 0x3f3   :  { %3873 = vrcp.f32 %v1716_v42  ;;  %v1717_v2 = vadd.f32 1.0, %v3854_v33  ;;  %v4803_v56 = vadd.f32 %v3338_v45, %v3330_v4  ;;  %v2946_v58 = vmul.f32 -1.442695, %v3338_v45  ;;  %v1358_v29 = vpop.f32.mrb[61].mxu0 }
 0x3f4   :  { %v4805_v35 = vpop.eup %3855  ;;  %3875 = vrcp.f32 %v1719_v46  ;;  %v4807_v53 = vadd.f32 %v1358_v29, %v1326_v55  ;;  %v2944_v13 = vmul.f32 -1.442695, %v1358_v29  ;;  %v3339_v9 = vpop.f32.mrb[62].mxu0 }
 0x3f5   :  { %v4809_v23 = vpop.eup %3857  ;;  %3877 = vrcp.f32 %v1717_v2  ;;  %v4811_v12 = vadd.f32 %v3339_v9, %v3331_v48  ;;  %v2947_v34 = vmul.f32 -1.442695, %v3339_v9  ;;  %v1361_v41 = vpop.f32.mrb[63].mxu0 }
 0x3f6   :  { %v4813_v18 = vpop.eup %3859  ;;  %3879 = vpow2.f32 %v2946_v58  ;;  %v4815_v4 = vadd.f32 %v1361_v41, %v1329_v1  ;;  %v2945_v42 = vmul.f32 -1.442695, %v1361_v41 }
 0x3f7   :  { %v4817_v33 = vpop.eup %3861  ;;  %3881 = vpow2.f32 %v2944_v13 }
 0x3f8   :  { %v3864_v46 = vpop.eup %3863  ;;  %3883 = vpow2.f32 %v2947_v34 }
 0x3f9   :  { %v3866_v45 = vpop.eup %3865  ;;  %v1722_v2 = vadd.f32 1.0, %v3864_v46  ;;  %3885 = vpow2.f32 %v2945_v42 }
 0x3fa   :  { %v3868_v29 = vpop.eup %3867  ;;  %v1720_v9 = vadd.f32 1.0, %v3866_v45  ;;  %v3342_v58 = vpop.f32.mrb[64].mxu0 }
 0x3fb   :  { %v3870_v1 = vpop.eup %3869  ;;  %3887 = vrcp.f32 %v1722_v2  ;;  %v1723_v41 = vadd.f32 1.0, %v3868_v29  ;;  %v1524_v39 = vadd.f32 %v3342_v58, %v1516_v14  ;;  %v2950_v60 = vmul.f32 -1.442695, %v3342_v58  ;;  %v1374_v13 = vpop.f32.mrb[65].mxu0 }
 0x3fc   :  { %v4823_v27 = vpop.eup %3871  ;;  %3889 = vrcp.f32 %v1720_v9  ;;  %v1721_v55 = vadd.f32 1.0, %v3870_v1  ;;  %v1522_v34 = vadd.f32 %v1514_v21, %v1374_v13  ;;  %v2948_v16 = vmul.f32 -1.442695, %v1374_v13  ;;  %v3343_v28 = vpop.f32.mrb[66].mxu0 }
 0x3fd   :  { %v4825_v48 = vpop.eup %3873  ;;  %3891 = vrcp.f32 %v1723_v41  ;;  %v2920_v42 = vmul.f32 -0.33333334, %v1524_v39  ;;  %v1525_v46 = vadd.f32 %v3343_v28, %v4799_v19  ;;  %v1377_v45 = vpop.f32.mrb[67].mxu0  ;;  %v2951_v19 = vmul.f32 -1.442695, %v3343_v28 }
 0x3fe   :  { %v4828_v8 = vpop.eup %3875  ;;  %3893 = vrcp.f32 %v1721_v55  ;;  %v2918_v14 = vmul.f32 -0.33333334, %v1522_v34  ;;  %v1523_v2 = vadd.f32 %v4801_v0, %v1377_v45  ;;  %v2949_v28 = vmul.f32 -1.442695, %v1377_v45 }
 0x3ff   :  { %v4831_v29 = vpop.eup %3877  ;;  %v1568_v9 = vmul.f32 1.442695, %v2920_v42  ;;  %3895 = vpow2.f32 %v2950_v60  ;;  %v2921_v21 = vmul.f32 -0.33333334, %v1525_v46 }
 0x400   :  { %v3880_v1 = vpop.eup %3879  ;;  %v1564_v41 = vmul.f32 1.442695, %v2918_v14  ;;  %3897 = vpow2.f32 %v2948_v16  ;;  %v2919_v55 = vmul.f32 -0.33333334, %v1523_v2 }
 0x401   :  { %v3882_v39 = vpop.eup %3881  ;;  %v1726_v13 = vadd.f32 1.0, %v3880_v1  ;;  %3899 = vpow2.f32 %v1568_v9  ;;  %v1570_v46 = vmul.f32 1.442695, %v2921_v21 }
 0x402   :  { %v3884_v34 = vpop.eup %3883  ;;  %v1724_v0 = vadd.f32 1.0, %v3882_v39  ;;  %3901 = vpow2.f32 %v1564_v41  ;;  %v3346_v31 = vpop.f32.mrb[68].mxu0  ;;  %v1566_v41 = vmul.f32 1.442695, %v2919_v55 }
 0x403   :  { %v3886_v42 = vpop.eup %3885  ;;  %3903 = vrcp.f32 %v1726_v13  ;;  %v1727_v60 = vadd.f32 1.0, %v3884_v34  ;;  %v1528_v58 = vadd.f32 %v3346_v31, %v4803_v56  ;;  %v1390_v59 = vpop.f32.mrb[69].mxu0  ;;  %v2954_v45 = vmul.f32 -1.442695, %v3346_v31 }
 0x404   :  { %v4838_v14 = vpop.f32.mrb[52].mxu1  ;;  %3905 = vrcp.f32 %v1724_v0  ;;  %v1725_v16 = vadd.f32 1.0, %v3886_v42  ;;  %v1526_v1 = vadd.f32 %v4807_v53, %v1390_v59  ;;  %v4841_v9 = vpop.f32.mrb[70].mxu0 }
 0x405   :  { %v3358_v2 = vpop.f32.mrb[53].mxu1  ;;  %v4843_v39 = vpop.eup %3887  ;;  %3907 = vrcp.f32 %v1727_v60  ;;  %v2924_v13 = vmul.f32 -0.33333334, %v1528_v58  ;;  %v1529_v21 = vadd.f32 %v4841_v9, %v4811_v12 }
 0x406   :  { %v4847_v56 = vpop.f32.mrb[71].mxu0  ;;  %v4849_v34 = vpop.f32.mrb[54].mxu1  ;;  %3909 = vrcp.f32 %v1725_v16  ;;  %v2922_v60 = vmul.f32 -0.33333334, %v1526_v1 }
 0x407   :  { %v4851_v0 = vpop.eup %3889  ;;  %v1527_v53 = vadd.f32 %v4815_v4, %v4847_v56  ;;  %v3359_v42 = vpop.f32.mrb[55].mxu1  ;;  %3911 = vpow2.f32 %v1570_v46  ;;  %v1576_v55 = vmul.f32 1.442695, %v2924_v13  ;;  %v4866_v4 = vld [vmem:[%s5403_s7] sm:$0xff]   ;;  %v2957_v51 = vmul.f32 -1.442695, %v4849_v34 }
 0x408   :  { %v4855_v2 = vpop.eup %3891  ;;  %3913 = vpow2.f32 %v2951_v19  ;;  %v2925_v19 = vmul.f32 -0.33333334, %v1529_v21  ;;  %3492 = vmatprep.subr.bf16.mxu1 %v4866_v4  ;;  %v1572_v15 = vmul.f32 1.442695, %v2922_v60  ;;  %v2952_v21 = vmul.f32 -1.442695, %v1390_v59 }
 0x409   :  { %v4857_v58 = vpop.eup %3893  ;;  %3915 = vpow2.f32 %v1566_v41  ;;  %v2923_v59 = vmul.f32 -0.33333334, %v1527_v53 }
 0x40a   :  { %v3896_v12 = vpop.eup %3895  ;;  %3917 = vpow2.f32 %v2949_v28  ;;  %v1578_v5 = vmul.f32 1.442695, %v2925_v19 }
 0x40b   :  { %v3898_v16 = vpop.eup %3897  ;;  %v1730_v46 = vadd.f32 1.0, %v3896_v12  ;;  %3919 = vpow2.f32 %v1576_v55  ;;  %v4868_v41 = vpop.f32.mrb[56].mxu1 }
 0x40c   :  { %v3900_v13 = vpop.eup %3899  ;;  %v1728_v42 = vadd.f32 1.0, %v3898_v16  ;;  %v3362_v37 = vpop.f32.mrb[57].mxu1 }
 0x40d   :  { %v3902_v1 = vpop.eup %3901  ;;  %v1582_v47 = vadd.f32 1.0, %v3900_v13  ;;  %3921 = vrcp.f32 %v1730_v46  ;;  %v4873_v12 = vpop.f32.mrb[58].mxu1 }
 0x40e   :  { %v4871_v54 = vpop.eup %3903  ;;  %v1580_v3 = vadd.f32 1.0, %v3902_v1  ;;  %3923 = vrcp.f32 %v1728_v42  ;;  %v3363_v55 = vpop.f32.mrb[59].mxu1 }
 0x40f   :  { %v4875_v28 = vpop.eup %3905  ;;  %3925 = vrcp.f32 %v1582_v47 }
 0x410   :  { %v4877_v16 = vpop.eup %3907  ;;  %3927 = vrcp.f32 %v1580_v3 }
 0x411   :  { %v4879_v13 = vpop.eup %3909  ;;  %3929 = vpow2.f32 %v2954_v45 }
 0x412   :  { %v3912_v31 = vpop.eup %3911  ;;  %3931 = vpow2.f32 %v1572_v15  ;;  %v2955_v15 = vmul.f32 -1.442695, %v4841_v9 }
 0x413   :  { %v3914_v46 = vpop.eup %3913  ;;  %v1583_v42 = vadd.f32 1.0, %v3912_v31  ;;  %3933 = vpow2.f32 %v2952_v21  ;;  %v4885_v3 = vpop.f32.mrb[60].mxu1  ;;  %v1574_v21 = vmul.f32 1.442695, %v2923_v59 }
 0x414   :  { %v3916_v47 = vpop.eup %3915  ;;  %v1731_v1 = vadd.f32 1.0, %v3914_v46  ;;  %3935 = vpow2.f32 %v1578_v5  ;;  %v3366_v55 = vpop.f32.mrb[61].mxu1  ;;  %v2953_v46 = vmul.f32 -1.442695, %v4847_v56 }
 0x415   :  { %v3918_v19 = vpop.eup %3917  ;;  %3937 = vrcp.f32 %v1583_v42  ;;  %v1581_v45 = vadd.f32 1.0, %v3916_v47  ;;  %v4888_v17 = vpop.f32.mrb[62].mxu1  ;;  %v2956_v47 = vmul.f32 -1.442695, %v4838_v14 }
 0x416   :  { %v3920_v6 = vpop.eup %3919  ;;  %3939 = vrcp.f32 %v1731_v1  ;;  %v1729_v37 = vadd.f32 1.0, %v3918_v19  ;;  %v3367_v31 = vpop.f32.mrb[63].mxu1 }
 0x417   :  { %v4890_v60 = vpop.eup %3921  ;;  %3941 = vrcp.f32 %v1581_v45  ;;  %v1586_v53 = vadd.f32 1.0, %v3920_v6 }
 0x418   :  { %v4892_v5 = vpop.eup %3923  ;;  %3943 = vrcp.f32 %v1729_v37 }
 0x419   :  { %v3926_v42 = vpop.eup %3925  ;;  %3945 = vrcp.f32 %v1586_v53 }
 0x41a   :  { %v3928_v1 = vpop.eup %3927  ;;  %3947 = vpow2.f32 %v2955_v15 }
 0x41b   :  { %v3930_v9 = vpop.eup %3929  ;;  %3949 = vpow2.f32 %v1574_v21  ;;  %v1467_v45 = vpop.f32.mrb[64].mxu1 }
 0x41c   :  { %v3932_v19 = vpop.eup %3931  ;;  %v1734_v55 = vadd.f32 1.0, %v3930_v9  ;;  %3951 = vpow2.f32 %v2953_v46  ;;  %v4897_v31 = vadd.f32 %v1467_v45, %v4838_v14  ;;  %v3370_v37 = vpop.f32.mrb[65].mxu1  ;;  %v2958_v9 = vmul.f32 -1.442695, %v4868_v41 }
 0x41d   :  { %v3934_v6 = vpop.eup %3933  ;;  %v1584_v59 = vadd.f32 1.0, %v3932_v19  ;;  %3953 = vpow2.f32 %v2956_v47  ;;  %v1470_v52 = vpop.f32.mrb[66].mxu1  ;;  %v2959_v14 = vmul.f32 -1.442695, %v4873_v12  ;;  %v2962_v61 = vmul.f32 -1.442695, %v1467_v45 }
 0x41e   :  { %v3936_v56 = vpop.eup %3935  ;;  %3955 = vrcp.f32 %v1734_v55  ;;  %v1732_v53 = vadd.f32 1.0, %v3934_v6  ;;  %v4902_v46 = vadd.f32 %v1470_v52, %v4849_v34  ;;  %v3371_v19 = vpop.f32.mrb[67].mxu1  ;;  %v2960_v6 = vmul.f32 -1.442695, %v4885_v3 }
 0x41f   :  { %v3938_v15 = vpop.eup %3937  ;;  %3957 = vrcp.f32 %v1584_v59  ;;  %v1587_v21 = vadd.f32 1.0, %v3936_v56  ;;  %v2961_v34 = vmul.f32 -1.442695, %v4888_v17 }
 0x420   :  { %v4904_v47 = vpop.eup %3939  ;;  %3959 = vrcp.f32 %v1732_v53  ;;  %v1893_v37 = vpack.c.bf16 %v3938_v15, %v3926_v42  ;;  %v3612_v42 = vld [vmem:[%s5402_s6 + $0x8] sm:$0xff]  }
 0x421   :  { %v3942_v55 = vpop.eup %3941  ;;  %3961 = vrcp.f32 %v1587_v21 }
 0x422   :  { %v4910_v56 = vpop.eup %3943  ;;  %3963 = vpow2.f32 %v2957_v51  ;;  %v1892_v63 = vpack.c.bf16 %v3942_v55, %v3928_v1 }
 0x423   :  { %v4913_v19 = vpop.eup %3945  ;;  %3965 = vpow2.f32 %v2958_v9  ;;  %v1475_v21 = vpop.f32.mrb[68].mxu1 }
 0x424   :  { %v3948_v15 = vpop.eup %3947  ;;  %3967 = vpow2.f32 %v2959_v14  ;;  %3396 = vmatprep.mubr.msk.bf16.mxu0 %vm107_vm1, %v1892_v63  ;;  %v4922_v1 = vadd.f32 %v1475_v21, %v4868_v41  ;;  %v3374_v55 = vpop.f32.mrb[69].mxu1 }
 0x425   :  { %v3950_v59 = vpop.eup %3949  ;;  %v1735_v51 = vadd.f32 1.0, %v3948_v15  ;;  %3969 = vpow2.f32 %v2960_v6  ;;  %3397 = vmatmul.mubr.msk.bf16.vlgmr.msra.gmra.mrb[72].mxu0 %vm107_vm1, %v1893_v37  ;;  %v1478_v36 = vpop.f32.mrb[70].mxu1  ;;  %v2963_v37 = vmul.f32 -1.442695, %v1470_v52 }
 0x426   :  { %v3952_v9 = vpop.eup %3951  ;;  %v1585_v53 = vadd.f32 1.0, %v3950_v59  ;;  %3971 = vpow2.f32 %v2961_v34  ;;  %3429 = vmatpush3.bf16.msra.mxu0 %v4796_v44  ;;  %v4927_v63 = vadd.f32 %v1478_v36, %v4873_v12  ;;  %v3375_v6 = vpop.f32.mrb[71].mxu1  ;;  %v2964_v59 = vmul.f32 -1.442695, %v1475_v21 }
 0x427   :  { %v3954_v7 = vpop.eup %3953  ;;  %3973 = vrcp.f32 %v1735_v51  ;;  %v1733_v14 = vadd.f32 1.0, %v3952_v9  ;;  %3430 = vmatprep.subr.bf16.mxu0 %v3612_v42  ;;  %v2965_v44 = vmul.f32 -1.442695, %v1478_v36 }
 0x428   :  { %v4929_v41 = vpop.eup %3955  ;;  %3975 = vrcp.f32 %v1585_v53  ;;  %v1838_v15 = vadd.f32 1.0, %v3954_v7 }
 0x429   :  { %v3958_v55 = vpop.eup %3957  ;;  %3977 = vrcp.f32 %v1733_v14 }
 0x42a   :  { %v4931_v34 = vpop.eup %3959  ;;  %3979 = vrcp.f32 %v1838_v15  ;;  %3431 = vmatpush3.bf16.msra.mxu0 %v3612_v42 }
 0x42b   :  { %v3962_v51 = vpop.eup %3961  ;;  %3981 = vpow2.f32 %v2962_v61  ;;  %v1483_v12 = vpop.f32.mrb[72].mxu1 }
 0x42c   :  { %v3964_v45 = vpop.eup %3963  ;;  %3983 = vpow2.f32 %v2963_v37  ;;  %v1895_v9 = vpack.c.bf16 %v3962_v51, %v4913_v19  ;;  %v4935_v52 = vadd.f32 %v1483_v12, %v4885_v3  ;;  %v3378_v7 = vpop.f32.mrb[73].mxu1  ;;  %v2966_v51 = vmul.f32 -1.442695, %v1483_v12 }
 0x42d   :  { %v3966_v6 = vpop.eup %3965  ;;  %v1839_v49 = vadd.f32 1.0, %v3964_v45  ;;  %3985 = vpow2.f32 %v2964_v59  ;;  %v1486_v14 = vpop.f32.mrb[74].mxu1 }
 0x42e   :  { %v3968_v53 = vpop.eup %3967  ;;  %v1840_v21 = vadd.f32 1.0, %v3966_v6  ;;  %3987 = vpow2.f32 %v2965_v44  ;;  %v4938_v61 = vadd.f32 %v1486_v14, %v4888_v17  ;;  %v3379_v15 = vpop.f32.mrb[75].mxu1  ;;  %v2967_v45 = vmul.f32 -1.442695, %v1486_v14 }
 0x42f   :  { %v3970_v36 = vpop.eup %3969  ;;  %3989 = vrcp.f32 %v1839_v49  ;;  %v1841_v42 = vadd.f32 1.0, %v3968_v53 }
 0x430   :  { %v3972_v37 = vpop.eup %3971  ;;  %3991 = vrcp.f32 %v1840_v21  ;;  %v1842_v19 = vadd.f32 1.0, %v3970_v36 }
 0x431   :  { %v4940_v59 = vpop.eup %3973  ;;  %3993 = vrcp.f32 %v1841_v42  ;;  %v1843_v3 = vadd.f32 1.0, %v3972_v37 }
 0x432   :  { %v3976_v7 = vpop.eup %3975  ;;  %3995 = vrcp.f32 %v1842_v19 }
 0x433   :  { %v4944_v49 = vpop.eup %3977  ;;  %3997 = vrcp.f32 %v1843_v3  ;;  %v1894_v17 = vpack.c.bf16 %v3976_v7, %v3958_v55  ;;  %v1491_v53 = vpop.f32.mrb[76].mxu1 }
 0x434   :  { %v4946_v6 = vpop.eup %3979  ;;  %3999 = vpow2.f32 %v2966_v51  ;;  %v1906_v12 = vpack.c.bf16 %v4944_v49, %v4931_v34  ;;  %v1544_v14 = vadd.f32 %v4897_v31, %v1491_v53  ;;  %v2968_v36 = vmul.f32 -1.442695, %v1491_v53  ;;  %v3382_v42 = vpop.f32.mrb[77].mxu1  ;;  %v5501_v34 = vld [vmem:[#allocation19_spill] sm:$0xff]  ;;  %v5504_v49 = vld [vmem:[#allocation29_spill] sm:$0xff] }
 0x435   :  { %v3982_v21 = vpop.eup %3981  ;;  %4001 = vpow2.f32 %v2967_v45  ;;  %3400 = vmatprep.mubr.msk.bf16.mxu0 %vm107_vm1, %v1894_v17  ;;  %v1494_v19 = vpop.f32.mrb[78].mxu1  ;;  %v5474_v45 = vpack.c.bf16 %v4817_v33, %v4809_v23 }
 0x436   :  { %v3984_v15 = vpop.eup %3983  ;;  %v1844_v37 = vadd.f32 1.0, %v3982_v21  ;;  %3401 = vmatmul.mubr.msk.bf16.gmra.mrb[76].mxu0 %vm107_vm1, %v1895_v9  ;;  %v2926_v51 = vmul.f32 -0.33333334, %v1544_v14  ;;  %4003 = vpow2.f32 %v2968_v36  ;;  %v1545_v7 = vadd.f32 %v4902_v46, %v1494_v19  ;;  %v3383_v44 = vpop.f32.mrb[79].mxu1 }
 0x437   :  { %v3986_v55 = vpop.eup %3985  ;;  %v1845_v3 = vadd.f32 1.0, %v3984_v15  ;;  %3404 = vmatprep.mubr.msk.bf16.mxu0 %vm107_vm1, %v5474_v45  ;;  %v2969_v14 = vmul.f32 -1.442695, %v1494_v19 }
 0x438   :  { %v3988_v31 = vpop.eup %3987  ;;  %4005 = vrcp.f32 %v1844_v37  ;;  %v1846_v17 = vadd.f32 1.0, %v3986_v55  ;;  %v1610_v9 = vmul.f32 1.442695, %v2926_v51  ;;  %v2927_v42 = vmul.f32 -0.33333334, %v1545_v7 }
 0x439   :  { %v4958_v53 = vpop.eup %3989  ;;  %4007 = vrcp.f32 %v1845_v3  ;;  %v1847_v21 = vadd.f32 1.0, %v3988_v31  ;;  %v5475_v31 = vpack.c.bf16 %v4813_v18, %v4805_v35 }
 0x43a   :  { %v4960_v15 = vpop.eup %3991  ;;  %4009 = vrcp.f32 %v1846_v17  ;;  %v2346_v46 = vpack.c.bf16 %v4958_v53, %v4946_v6  ;;  %v1612_v23 = vmul.f32 1.442695, %v2927_v42  ;;  %v5507_v53 = vld [vmem:[#allocation2_spill] sm:$0xff] }
 0x43b   :  { %v4964_v44 = vpop.eup %3993  ;;  %4011 = vrcp.f32 %v1847_v21  ;;  %v1499_v36 = vpop.f32.mrb[80].mxu1 }
 0x43c   :  { %v4966_v33 = vpop.eup %3995  ;;  %4013 = vpow2.f32 %v1610_v9  ;;  %v2347_v37 = vpack.c.bf16 %v4964_v44, %v4960_v15  ;;  %v1546_v3 = vadd.f32 %v4922_v1, %v1499_v36  ;;  %v2970_v19 = vmul.f32 -1.442695, %v1499_v36  ;;  %v3386_v51 = vpop.f32.mrb[81].mxu1  ;;  %v5510_v44 = vld [vmem:[#allocation4_spill] sm:$0xff] }
 0x43d   :  { %v4970_v55 = vpop.eup %3997  ;;  %4015 = vpow2.f32 %v1612_v23  ;;  %v1502_v45 = vpop.f32.mrb[82].mxu1  ;;  %v5476_v36 = vpack.c.bf16 %v4831_v29, %v4825_v48 }
 0x43e   :  { %v4000_v7 = vpop.eup %3999  ;;  %4017 = vpow2.f32 %v2969_v14  ;;  %3405 = vmatmul.mubr.msk.bf16.gmra.mrb[80].mxu0 %vm107_vm1, %v5475_v31  ;;  %v2928_v42 = vmul.f32 -0.33333334, %v1546_v3  ;;  %v1547_v23 = vadd.f32 %v4927_v63, %v1502_v45  ;;  %v3387_v1 = vpop.f32.mrb[83].mxu1  ;;  %v2971_v17 = vmul.f32 -1.442695, %v1502_v45 }
 0x43f   :  { %v4002_v21 = vpop.eup %4001  ;;  %v1848_v9 = vadd.f32 1.0, %v4000_v7  ;;  %4019 = vpow2.f32 %v2970_v19  ;;  %3408 = vmatprep.mubr.msk.bf16.mxu0 %vm107_vm1, %v5476_v36  ;;  %v5477_v36 = vpack.c.bf16 %v4828_v8, %v4823_v27 }
 0x440   :  { %v1849_v14 = vadd.f32 1.0, %v4002_v21  ;;  %v4004_v51 = vpop.eup %4003  ;;  %v1614_v35 = vmul.f32 1.442695, %v2928_v42  ;;  %v2929_v18 = vmul.f32 -0.33333334, %v1547_v23 }
 0x441   :  { %4021 = vrcp.f32 %v1848_v9  ;;  %v1850_v3 = vadd.f32 1.0, %v4004_v51 }
 0x442   :  { %v4984_v31 = vpop.eup %4005  ;;  %4023 = vrcp.f32 %v1849_v14  ;;  %v1616_v63 = vmul.f32 1.442695, %v2929_v18 }
 0x443   :  { %v4986_v7 = vpop.eup %4007  ;;  %4025 = vpow2.f32 %v1614_v35  ;;  %v1507_v1 = vpop.f32.mrb[84].mxu1 }
 0x444   :  { %v4988_v19 = vpop.eup %4009  ;;  %v2349_v48 = vpack.c.bf16 %v4986_v7, %v4984_v31  ;;  %4027 = vpow2.f32 %v1616_v63  ;;  %v1548_v21 = vadd.f32 %v4935_v52, %v1507_v1  ;;  %v2972_v9 = vmul.f32 -1.442695, %v1507_v1  ;;  %v3390_v42 = vpop.f32.mrb[85].mxu1  ;;  %v5515_v7 = vld [vmem:[#allocation35_spill] sm:$0xff] }
 0x445   :  { %v4992_v29 = vpop.eup %4011  ;;  %4029 = vpow2.f32 %v2971_v17  ;;  %v1510_v45 = vpop.f32.mrb[86].mxu1  ;;  %v5478_v52 = vpack.c.bf16 %v4857_v58, %v4851_v0 }
 0x446   :  { %v4014_v23 = vpop.eup %4013  ;;  %3409 = vmatmul.mubr.msk.bf16.gmra.mrb[84].mxu0 %vm107_vm1, %v5477_v36  ;;  %4031 = vrcp.f32 %v1850_v3  ;;  %v2930_v18 = vmul.f32 -0.33333334, %v1548_v21  ;;  %v1549_v63 = vadd.f32 %v4938_v61, %v1510_v45  ;;  %v3391_v17 = vpop.f32.mrb[87].mxu1  ;;  %v2973_v61 = vmul.f32 -1.442695, %v1510_v45 }
 0x447   :  { %v4016_v51 = vpop.eup %4015  ;;  %v1622_v35 = vadd.f32 1.0, %v4014_v23  ;;  %3412 = vmatprep.mubr.msk.bf16.mxu0 %vm107_vm1, %v5478_v52  ;;  %4033 = vpow2.f32 %v2972_v9  ;;  %v5480_v45 = vpack.c.bf16 %v4879_v13, %v4875_v28 }
 0x448   :  { %v4018_v1 = vpop.eup %4017  ;;  %v1623_v42 = vadd.f32 1.0, %v4016_v51  ;;  %v1618_v36 = vmul.f32 1.442695, %v2930_v18  ;;  %v2931_v14 = vmul.f32 -0.33333334, %v1549_v63 }
 0x449   :  { %v4020_v27 = vpop.eup %4019  ;;  %4035 = vrcp.f32 %v1622_v35  ;;  %v1851_v8 = vadd.f32 1.0, %v4018_v1  ;;  %v5479_v35 = vpack.c.bf16 %v4855_v2, %v4843_v39 }
 0x44a   :  { %4037 = vrcp.f32 %v1623_v42  ;;  %v1620_v3 = vmul.f32 1.442695, %v2931_v14  ;;  %v1852_v0 = vadd.f32 1.0, %v4020_v27 }
 0x44b   :  { %v5006_v23 = vpop.eup %4021  ;;  %4039 = vrcp.f32 %v1851_v8 }
 0x44c   :  { %v5008_v21 = vpop.eup %4023  ;;  %4041 = vpow2.f32 %v1618_v36  ;;  %v5481_v36 = vpack.c.bf16 %v4877_v16, %v4871_v54 }
 0x44d   :  { %v4026_v58 = vpop.eup %4025  ;;  %v2351_v51 = vpack.c.bf16 %v5008_v21, %v5006_v23  ;;  %4043 = vpow2.f32 %v1620_v3  ;;  %v5482_v3 = vpack.c.bf16 %v4910_v56, %v4892_v5  ;;  %v3614_v5 = vld [vmem:[%s5403_s7 + $0x8] sm:$0xff]   ;;  %v5483_v56 = vpack.c.bf16 %v4904_v47, %v4890_v60  ;;  %v5519_v23 = vld [vmem:[#allocation6_spill] sm:$0xff] }
 0x44e   :  { %v1624_v9 = vadd.f32 1.0, %v4026_v58  ;;  %3413 = vmatmul.mubr.msk.bf16.gmra.mrb[88].mxu0 %vm107_vm1, %v5479_v35  ;;  %v4028_v18 = vpop.eup %4027  ;;  %4045 = vpow2.f32 %v2973_v61  ;;  %v5484_v60 = vpack.c.bf16 %v4940_v59, %v4929_v41  ;;  %v5496_v41 = vld [vmem:[#allocation25_spill] sm:$0xff] }
 0x44f   :  { %3416 = vmatprep.mubr.msk.bf16.mxu0 %vm107_vm1, %v5480_v45  ;;  %v4030_v14 = vpop.eup %4029  ;;  %4047 = vrcp.f32 %v1852_v0  ;;  %v1625_v63 = vadd.f32 1.0, %v4028_v18 }
 0x450   :  { %v4032_v52 = vpop.eup %4031  ;;  %4049 = vrcp.f32 %v1624_v9  ;;  %v1853_v17 = vadd.f32 1.0, %v4030_v14 }
 0x451   :  { %v4034_v1 = vpop.eup %4033  ;;  %4051 = vrcp.f32 %v1625_v63 }
 0x452   :  { %4053 = vrcp.f32 %v1853_v17  ;;  %v1854_v27 = vadd.f32 1.0, %v4034_v1 }
 0x453   :  { %v4036_v42 = vpop.eup %4035 }
 0x454   :  { %v4038_v39 = vpop.eup %4037  ;;  %4055 = vrcp.f32 %v1854_v27 }
 0x455   :  { %v4040_v2 = vpop.eup %4039  ;;  %v2343_v8 = vpack.c.bf16 %v4038_v39, %v4036_v42 }
 0x456   :  { %3417 = vmatmul.mubr.msk.bf16.gmra.mrb[92].mxu0 %vm107_vm1, %v5481_v36  ;;  %v2352_v28 = vpack.c.bf16 %v4040_v2, %v4032_v52  ;;  %v4042_v13 = vpop.eup %4041  ;;  %v5522_v2 = vld [vmem:[#allocation8_spill] sm:$0xff] }
 0x457   :  { %3468 = vmatprep.mubr.msk.bf16.mxu1 %vm107_vm1, %v2343_v8  ;;  %3420 = vmatprep.mubr.msk.bf16.mxu0 %vm107_vm1, %v5482_v3  ;;  %v4044_v61 = vpop.eup %4043  ;;  %v1626_v0 = vadd.f32 1.0, %v4042_v13  ;;  %v5524_v8 = vld [vmem:[#allocation33_spill] sm:$0xff]  ;;  %v5525_v36 = vld [vmem:[#allocation32_spill] sm:$0xff]  ;;  %v5527_v13 = vld [vmem:[#allocation11_spill] sm:$0xff] }
 0x458   :  { %v4046_v58 = vpop.eup %4045  ;;  %v1627_v9 = vadd.f32 1.0, %v4044_v61  ;;  %v5528_v3 = vld [vmem:[#allocation10_spill] sm:$0xff] }
 0x459   :  { %v4048_v35 = vpop.eup %4047  ;;  %4057 = vrcp.f32 %v1626_v0  ;;  %v1855_v18 = vadd.f32 1.0, %v4046_v58  ;;  %v5529_v61 = vpack.c.bf16 %v5527_v13, %v5528_v3  ;;  %v5530_v0 = vld [vmem:[#allocation14_spill] sm:$0xff]  ;;  %v5531_v58 = vld [vmem:[#allocation13_spill] sm:$0xff] }
 0x45a   :  { %v4050_v54 = vpop.eup %4049  ;;  %4059 = vrcp.f32 %v1627_v9  ;;  %v5532_v9 = vpack.c.bf16 %v5530_v0, %v5531_v58 }
 0x45b   :  { %v4052_v16 = vpop.eup %4051  ;;  %4061 = vrcp.f32 %v1855_v18  ;;  %v5534_v18 = vld [vmem:[#allocation16_spill] sm:$0xff] }
 0x45c   :  { %v4054_v45 = vpop.eup %4053  ;;  %v2344_v14 = vpack.c.bf16 %v4052_v16, %v4050_v54  ;;  %v5536_v16 = vld [vmem:[#allocation20_spill] sm:$0xff] }
 0x45d   :  { %v2353_v63 = vpack.c.bf16 %v4054_v45, %v4048_v35  ;;  %v5533_v35 = vld [vmem:[#allocation17_spill] sm:$0xff]  ;;  %v5537_v45 = vld [vmem:[#allocation18_spill] sm:$0xff] }
 0x45e   :  { %3421 = vmatmul.mubr.msk.bf16.gmra.mrb[96].mxu0 %vm107_vm1, %v5483_v56  ;;  %3469 = vmatmul.mubr.msk.bf16.vlgmr.msra.gmra.mrb[88].mxu1 %vm107_vm1, %v2344_v14  ;;  %v4056_v52 = vpop.eup %4055  ;;  %v5535_v54 = vpack.c.bf16 %v5533_v35, %v5534_v18  ;;  %v5538_v14 = vpack.c.bf16 %v5536_v16, %v5537_v45  ;;  %v5540_v56 = vld [vmem:[#allocation22_spill] sm:$0xff] }
 0x45f   :  { %3424 = vmatprep.mubr.msk.bf16.mxu0 %vm107_vm1, %v1906_v12  ;;  %3493 = vmatpush3.bf16.msra.mxu1 %v4866_v4  ;;  %v5486_v4 = vpack.c.bf16 %v4455_v50, %v4448_v57  ;;  %v5489_v57 = vpack.c.bf16 %v4540_v26, %v4494_v32  ;;  %v5490_v50 = vpack.c.bf16 %v4500_v40, %v4475_v22  ;;  %v5495_v26 = vld [vmem:[#allocation27_spill] sm:$0xff]  ;;  %v5498_v40 = vld [vmem:[#allocation21_spill] sm:$0xff] }
 0x460   :  { %3494 = vmatprep.subr.bf16.mxu1 %v3614_v5  ;;  %v5497_v22 = vpack.c.bf16 %v5495_v26, %v5496_v41  ;;  %v5506_v12 = vld [vmem:[#allocation3_spill] sm:$0xff] }
 0x461   :  { %v5508_v15 = vpack.c.bf16 %v5506_v12, %v5507_v53 }
 0x463   :  { %v4058_v17 = vpop.eup %4057  ;;  %3495 = vmatpush3.bf16.msra.mxu1 %v3614_v5  ;;  %v5539_v5 = vld [vmem:[#allocation24_spill] sm:$0xff] }
 0x464   :  { %v4060_v1 = vpop.eup %4059 }
 0x465   :  { %v4062_v42 = vpop.eup %4061  ;;  %v2345_v39 = vpack.c.bf16 %v4060_v1, %v4058_v17 }
 0x466   :  { %3425 = vmatmul.mubr.msk.bf16.gmra.mrb[100].mxu0 %vm107_vm1, %v5484_v60  ;;  %v2354_v47 = vpack.c.bf16 %v4062_v42, %v4056_v52 }
 0x467   :  { %3432 = vmatprep.mubr.msk.bf16.mxu0 %vm107_vm1, %v4650_v38  ;;  %3472 = vmatprep.mubr.msk.bf16.mxu1 %vm107_vm1, %v2345_v39  ;;  %v5485_v38 = vpack.c.bf16 %v4970_v55, %v4966_v33  ;;  %v5513_v55 = vld [vmem:[#allocation28_spill] sm:$0xff] }
 0x468   :  { %3473 = vmatmul.mubr.msk.bf16.gmra.mrb[92].mxu1 %vm107_vm1, %v2346_v46  ;;  %v5509_v46 = vld [vmem:[#allocation5_spill] sm:$0xff] }
 0x469   :  { %3476 = vmatprep.mubr.msk.bf16.mxu1 %vm107_vm1, %v2347_v37  ;;  %v5511_v33 = vpack.c.bf16 %v5509_v46, %v5510_v44  ;;  %v5512_v37 = vld [vmem:[#allocation30_spill] sm:$0xff] }
 0x46a   :  { %v5514_v31 = vpack.c.bf16 %v5512_v37, %v5513_v55 }
 0x46e   :  { %3433 = vmatmul.mubr.msk.bf16.vlgmr.msra.gmra.mrb[72].mxu0 %vm107_vm1, %v4644_v11  ;;  %v5487_v11 = vpack.c.bf16 %v4992_v29, %v4988_v19  ;;  %v5516_v19 = vld [vmem:[#allocation34_spill] sm:$0xff]  ;;  %v5518_v29 = vld [vmem:[#allocation7_spill] sm:$0xff] }
 0x46f   :  { %3436 = vmatprep.mubr.msk.bf16.mxu0 %vm107_vm1, %v4672_v10  ;;  %v5488_v10 = vpack.c.bf16 %v4450_v62, %v4424_v20  ;;  %v5492_v20 = vld [vmem:[#allocation15_spill] sm:$0xff]  ;;  %v5493_v62 = vld [vmem:[#allocation12_spill] sm:$0xff]  ;;  %v5520_v21 = vpack.c.bf16 %v5518_v29, %v5519_v23 }
 0x470   :  { %3477 = vmatmul.mubr.msk.bf16.gmra.mrb[96].mxu1 %vm107_vm1, %v5485_v38  ;;  %v5494_v32 = vpack.c.bf16 %v5492_v20, %v5493_v62 }
 0x471   :  { %3480 = vmatprep.mubr.msk.bf16.mxu1 %vm107_vm1, %v2349_v48  ;;  %v5517_v48 = vpack.c.bf16 %v5515_v7, %v5516_v19 }
 0x476   :  { %3437 = vmatmul.mubr.msk.bf16.gmra.mrb[76].mxu0 %vm107_vm1, %v4664_v25  ;;  %v5491_v25 = vpack.c.bf16 %v4577_v43, %v4560_v24  ;;  %v5499_v24 = vld [vmem:[#allocation23_spill] sm:$0xff]  ;;  %v5500_v43 = vld [vmem:[#allocation26_spill] sm:$0xff] }
 0x477   :  { %3440 = vmatprep.mubr.msk.bf16.mxu0 %vm107_vm1, %v5486_v4  ;;  %v5502_v59 = vpack.c.bf16 %v5500_v43, %v5501_v34 }
 0x478   :  { %3481 = vmatmul.mubr.msk.bf16.gmra.mrb[100].mxu1 %vm107_vm1, %v5487_v11 }
 0x479   :  { %3484 = vmatprep.mubr.msk.bf16.mxu1 %vm107_vm1, %v2351_v51  ;;  %v5521_v51 = vld [vmem:[#allocation9_spill] sm:$0xff] }
 0x47a   :  { %v5523_v27 = vpack.c.bf16 %v5521_v51, %v5522_v2 }
 0x47e   :  { %3441 = vmatmul.mubr.msk.bf16.gmra.mrb[80].mxu0 %vm107_vm1, %v5488_v10 }
 0x47f   :  { %3444 = vmatprep.mubr.msk.bf16.mxu0 %vm107_vm1, %v5489_v57 }
 0x480   :  { %3485 = vmatmul.mubr.msk.bf16.gmra.mrb[104].mxu1 %vm107_vm1, %v2352_v28  ;;  %v5526_v28 = vpack.c.bf16 %v5524_v8, %v5525_v36 }
 0x481   :  { %3488 = vmatprep.mubr.msk.bf16.mxu1 %vm107_vm1, %v2353_v63  ;;  %v5541_v63 = vpack.c.bf16 %v5539_v5, %v5540_v56 }
 0x486   :  { %3445 = vmatmul.mubr.msk.bf16.gmra.mrb[84].mxu0 %vm107_vm1, %v5490_v50 }
 0x487   :  { %3448 = vmatprep.mubr.msk.bf16.mxu0 %vm107_vm1, %v5491_v25 }
 0x488   :  { %3489 = vmatmul.mubr.msk.bf16.gmra.mrb[108].mxu1 %vm107_vm1, %v2354_v47 }
 0x489   :  { %3496 = vmatprep.mubr.msk.bf16.mxu1 %vm107_vm1, %v4583_v30  ;;  %v5503_v30 = vld [vmem:[#allocation31_spill] sm:$0xff] }
 0x48a   :  { %v5505_v6 = vpack.c.bf16 %v5503_v30, %v5504_v49 }
 0x48e   :  { %3449 = vmatmul.mubr.msk.bf16.gmra.mrb[88].mxu0 %vm107_vm1, %v5494_v32 }
 0x48f   :  { %3452 = vmatprep.mubr.msk.bf16.mxu0 %vm107_vm1, %v5497_v22 }
 0x490   :  { %3497 = vmatmul.mubr.msk.bf16.vlgmr.msra.gmra.mrb[88].mxu1 %vm107_vm1, %v5498_v40 }
 0x491   :  { %3500 = vmatprep.mubr.msk.bf16.mxu1 %vm107_vm1, %v5499_v24 }
 0x496   :  { %3453 = vmatmul.mubr.msk.bf16.gmra.mrb[92].mxu0 %vm107_vm1, %v5502_v59 }
 0x497   :  { %3456 = vmatprep.mubr.msk.bf16.mxu0 %vm107_vm1, %v5505_v6 }
 0x498   :  { %3501 = vmatmul.mubr.msk.bf16.gmra.mrb[92].mxu1 %vm107_vm1, %v5508_v15 }
 0x499   :  { %3504 = vmatprep.mubr.msk.bf16.mxu1 %vm107_vm1, %v5511_v33 }
 0x49e   :  { %3457 = vmatmul.mubr.msk.bf16.gmra.mrb[96].mxu0 %vm107_vm1, %v5514_v31 }
 0x49f   :  { %3460 = vmatprep.mubr.msk.bf16.mxu0 %vm107_vm1, %v5517_v48 }
 0x4a0   :  { %3505 = vmatmul.mubr.msk.bf16.gmra.mrb[96].mxu1 %vm107_vm1, %v5520_v21 }
 0x4a1   :  { %3508 = vmatprep.mubr.msk.bf16.mxu1 %vm107_vm1, %v5523_v27 }
 0x4a6   :  { %3461 = vmatmul.mubr.msk.bf16.gmra.mrb[100].mxu0 %vm107_vm1, %v5526_v28 }
 0x4a8   :  { %3509 = vmatmul.mubr.msk.bf16.gmra.mrb[100].mxu1 %vm107_vm1, %v5529_v61 }
 0x4a9   :  { %3512 = vmatprep.mubr.msk.bf16.mxu1 %vm107_vm1, %v5532_v9 }
 0x4b0   :  { %3513 = vmatmul.mubr.msk.bf16.gmra.mrb[104].mxu1 %vm107_vm1, %v5535_v54 }
 0x4b1   :  { %3516 = vmatprep.mubr.msk.bf16.mxu1 %vm107_vm1, %v5538_v14 }
 0x4b8   :  { %3517 = vmatmul.mubr.msk.bf16.gmra.mrb[108].mxu1 %vm107_vm1, %v5541_v63 }
 0x541   :  { %v3434_v52 = vpop.f32.mrb[72].mxu0 }
 0x542   :  { %2707 = vst.msk [vmem:[%s5404_s8 + $0x10] sm:$0xff] %vm107_vm1, %v3434_v52  ;;  %v2216_v17 = vpop.f32.mrb[73].mxu0 }
 0x543   :  { %2705 = vst.msk [vmem:[%s5404_s8] sm:$0xff] %vm107_vm1, %v2216_v17  ;;  %v3435_v1 = vpop.f32.mrb[74].mxu0 }
 0x544   :  { %2708 = vst.msk [vmem:[%s5404_s8 + $0x18] sm:$0xff] %vm107_vm1, %v3435_v1  ;;  %v2219_v42 = vpop.f32.mrb[75].mxu0 }
 0x545   :  { %2706 = vst.msk [vmem:[%s5404_s8 + $0x8] sm:$0xff] %vm107_vm1, %v2219_v42 }
 0x549   :  { %v3438_v39 = vpop.f32.mrb[76].mxu0 }
 0x54a   :  { %2711 = vst.msk [vmem:[%s5404_s8 + $0x30] sm:$0xff] %vm107_vm1, %v3438_v39  ;;  %v2232_v60 = vpop.f32.mrb[77].mxu0 }
 0x54b   :  { %2709 = vst.msk [vmem:[%s5404_s8 + $0x20] sm:$0xff] %vm107_vm1, %v2232_v60  ;;  %v3439_v47 = vpop.f32.mrb[78].mxu0 }
 0x54c   :  { %2712 = vst.msk [vmem:[%s5404_s8 + $0x38] sm:$0xff] %vm107_vm1, %v3439_v47  ;;  %v2235_v38 = vpop.f32.mrb[79].mxu0 }
 0x54d   :  { %2710 = vst.msk [vmem:[%s5404_s8 + $0x28] sm:$0xff] %vm107_vm1, %v2235_v38 }
 0x551   :  { %v3442_v4 = vpop.f32.mrb[80].mxu0 }
 0x552   :  { %2715 = vst.msk [vmem:[%s5404_s8 + $0x50] sm:$0xff] %vm107_vm1, %v3442_v4  ;;  %v2248_v11 = vpop.f32.mrb[81].mxu0 }
 0x553   :  { %2713 = vst.msk [vmem:[%s5404_s8 + $0x40] sm:$0xff] %vm107_vm1, %v2248_v11  ;;  %v3443_v10 = vpop.f32.mrb[82].mxu0 }
 0x554   :  { %2716 = vst.msk [vmem:[%s5404_s8 + $0x58] sm:$0xff] %vm107_vm1, %v3443_v10  ;;  %v2251_v57 = vpop.f32.mrb[83].mxu0 }
 0x555   :  { %2714 = vst.msk [vmem:[%s5404_s8 + $0x48] sm:$0xff] %vm107_vm1, %v2251_v57 }
 0x559   :  { %v3446_v50 = vpop.f32.mrb[84].mxu0 }
 0x55a   :  { %2719 = vst.msk [vmem:[%s5404_s8 + $0x70] sm:$0xff] %vm107_vm1, %v3446_v50  ;;  %v2264_v25 = vpop.f32.mrb[85].mxu0 }
 0x55b   :  { %2717 = vst.msk [vmem:[%s5404_s8 + $0x60] sm:$0xff] %vm107_vm1, %v2264_v25  ;;  %v3447_v20 = vpop.f32.mrb[86].mxu0 }
 0x55c   :  { %2720 = vst.msk [vmem:[%s5404_s8 + $0x78] sm:$0xff] %vm107_vm1, %v3447_v20  ;;  %v2267_v62 = vpop.f32.mrb[87].mxu0 }
 0x55d   :  { %2718 = vst.msk [vmem:[%s5404_s8 + $0x68] sm:$0xff] %vm107_vm1, %v2267_v62 }
 0x561   :  { %v3450_v32 = vpop.f32.mrb[88].mxu0 }
 0x562   :  { %2723 = vst.msk [vmem:[%s5404_s8 + $0x90] sm:$0xff] %vm107_vm1, %v3450_v32  ;;  %v2280_v26 = vpop.f32.mrb[89].mxu0 }
 0x563   :  { %2721 = vst.msk [vmem:[%s5404_s8 + $0x80] sm:$0xff] %vm107_vm1, %v2280_v26  ;;  %v3451_v41 = vpop.f32.mrb[90].mxu0  ;;  %v3498_v22 = vpop.f32.mrb[88].mxu1 }
 0x564   :  { %2724 = vst.msk [vmem:[%s5404_s8 + $0x98] sm:$0xff] %vm107_vm1, %v3451_v41  ;;  %v2283_v40 = vpop.f32.mrb[91].mxu0  ;;  %2739 = vst.msk [vmem:[%s5405_s9 + $0x10] sm:$0xff] %vm107_vm1, %v3498_v22  ;;  %v2610_v24 = vpop.f32.mrb[89].mxu1 }
 0x565   :  { %2722 = vst.msk [vmem:[%s5404_s8 + $0x88] sm:$0xff] %vm107_vm1, %v2283_v40  ;;  %2737 = vst.msk [vmem:[%s5405_s9] sm:$0xff] %vm107_vm1, %v2610_v24  ;;  %v3499_v43 = vpop.f32.mrb[90].mxu1 }
 0x566   :  { %2740 = vst.msk [vmem:[%s5405_s9 + $0x18] sm:$0xff] %vm107_vm1, %v3499_v43  ;;  %v2613_v34 = vpop.f32.mrb[91].mxu1 }
 0x567   :  { %2738 = vst.msk [vmem:[%s5405_s9 + $0x8] sm:$0xff] %vm107_vm1, %v2613_v34 }
 0x569   :  { %v3454_v59 = vpop.f32.mrb[92].mxu0 }
 0x56a   :  { %2727 = vst.msk [vmem:[%s5404_s8 + $0xb0] sm:$0xff] %vm107_vm1, %v3454_v59  ;;  %v2296_v30 = vpop.f32.mrb[93].mxu0 }
 0x56b   :  { %2725 = vst.msk [vmem:[%s5404_s8 + $0xa0] sm:$0xff] %vm107_vm1, %v2296_v30  ;;  %v3455_v49 = vpop.f32.mrb[94].mxu0  ;;  %v3502_v6 = vpop.f32.mrb[92].mxu1 }
 0x56c   :  { %2728 = vst.msk [vmem:[%s5404_s8 + $0xb8] sm:$0xff] %vm107_vm1, %v3455_v49  ;;  %v2299_v12 = vpop.f32.mrb[95].mxu0  ;;  %2743 = vst.msk [vmem:[%s5405_s9 + $0x30] sm:$0xff] %vm107_vm1, %v3502_v6  ;;  %v2626_v53 = vpop.f32.mrb[93].mxu1 }
 0x56d   :  { %2726 = vst.msk [vmem:[%s5404_s8 + $0xa8] sm:$0xff] %vm107_vm1, %v2299_v12  ;;  %2741 = vst.msk [vmem:[%s5405_s9 + $0x20] sm:$0xff] %vm107_vm1, %v2626_v53  ;;  %v3503_v15 = vpop.f32.mrb[94].mxu1 }
 0x56e   :  { %2744 = vst.msk [vmem:[%s5405_s9 + $0x38] sm:$0xff] %vm107_vm1, %v3503_v15  ;;  %v2629_v46 = vpop.f32.mrb[95].mxu1 }
 0x56f   :  { %2742 = vst.msk [vmem:[%s5405_s9 + $0x28] sm:$0xff] %vm107_vm1, %v2629_v46 }
 0x571   :  { %v3458_v44 = vpop.f32.mrb[96].mxu0 }
 0x572   :  { %2731 = vst.msk [vmem:[%s5404_s8 + $0xd0] sm:$0xff] %vm107_vm1, %v3458_v44  ;;  %v2312_v33 = vpop.f32.mrb[97].mxu0 }
 0x573   :  { %2729 = vst.msk [vmem:[%s5404_s8 + $0xc0] sm:$0xff] %vm107_vm1, %v2312_v33  ;;  %v3459_v37 = vpop.f32.mrb[98].mxu0  ;;  %v3506_v55 = vpop.f32.mrb[96].mxu1 }
 0x574   :  { %2732 = vst.msk [vmem:[%s5404_s8 + $0xd8] sm:$0xff] %vm107_vm1, %v3459_v37  ;;  %v2315_v31 = vpop.f32.mrb[99].mxu0  ;;  %2747 = vst.msk [vmem:[%s5405_s9 + $0x50] sm:$0xff] %vm107_vm1, %v3506_v55  ;;  %v2642_v7 = vpop.f32.mrb[97].mxu1 }
 0x575   :  { %2730 = vst.msk [vmem:[%s5404_s8 + $0xc8] sm:$0xff] %vm107_vm1, %v2315_v31  ;;  %2745 = vst.msk [vmem:[%s5405_s9 + $0x40] sm:$0xff] %vm107_vm1, %v2642_v7  ;;  %v3507_v19 = vpop.f32.mrb[98].mxu1 }
 0x576   :  { %2748 = vst.msk [vmem:[%s5405_s9 + $0x58] sm:$0xff] %vm107_vm1, %v3507_v19  ;;  %v2645_v48 = vpop.f32.mrb[99].mxu1 }
 0x577   :  { %2746 = vst.msk [vmem:[%s5405_s9 + $0x48] sm:$0xff] %vm107_vm1, %v2645_v48 }
 0x579   :  { %v3462_v29 = vpop.f32.mrb[100].mxu0 }
 0x57a   :  { %2735 = vst.msk [vmem:[%s5404_s8 + $0xf0] sm:$0xff] %vm107_vm1, %v3462_v29  ;;  %v2328_v23 = vpop.f32.mrb[101].mxu0 }
 0x57b   :  { %2733 = vst.msk [vmem:[%s5404_s8 + $0xe0] sm:$0xff] %vm107_vm1, %v2328_v23  ;;  %v3463_v21 = vpop.f32.mrb[102].mxu0  ;;  %v3510_v51 = vpop.f32.mrb[100].mxu1 }
 0x57c   :  { %2736 = vst.msk [vmem:[%s5404_s8 + $0xf8] sm:$0xff] %vm107_vm1, %v3463_v21  ;;  %v2331_v2 = vpop.f32.mrb[103].mxu0  ;;  %2751 = vst.msk [vmem:[%s5405_s9 + $0x70] sm:$0xff] %vm107_vm1, %v3510_v51  ;;  %v2658_v27 = vpop.f32.mrb[101].mxu1 }
 0x57d   :  { %2734 = vst.msk [vmem:[%s5404_s8 + $0xe8] sm:$0xff] %vm107_vm1, %v2331_v2  ;;  %2749 = vst.msk [vmem:[%s5405_s9 + $0x60] sm:$0xff] %vm107_vm1, %v2658_v27  ;;  %v3511_v8 = vpop.f32.mrb[102].mxu1 }
 0x57e   :  { %2752 = vst.msk [vmem:[%s5405_s9 + $0x78] sm:$0xff] %vm107_vm1, %v3511_v8  ;;  %v2661_v36 = vpop.f32.mrb[103].mxu1 }
 0x57f   :  { %2750 = vst.msk [vmem:[%s5405_s9 + $0x68] sm:$0xff] %vm107_vm1, %v2661_v36 }
 0x583   :  { %v3514_v28 = vpop.f32.mrb[104].mxu1 }
 0x584   :  { %2755 = vst.msk [vmem:[%s5405_s9 + $0x90] sm:$0xff] %vm107_vm1, %v3514_v28  ;;  %v2674_v13 = vpop.f32.mrb[105].mxu1 }
 0x585   :  { %2753 = vst.msk [vmem:[%s5405_s9 + $0x80] sm:$0xff] %vm107_vm1, %v2674_v13  ;;  %v3515_v3 = vpop.f32.mrb[106].mxu1 }
 0x586   :  { %2756 = vst.msk [vmem:[%s5405_s9 + $0x98] sm:$0xff] %vm107_vm1, %v3515_v3  ;;  %v2677_v61 = vpop.f32.mrb[107].mxu1 }
 0x587   :  { %2754 = vst.msk [vmem:[%s5405_s9 + $0x88] sm:$0xff] %vm107_vm1, %v2677_v61 }
 0x58b   :  { %v3518_v0 = vpop.f32.mrb[108].mxu1 }
 0x58c   :  { %2759 = vst.msk [vmem:[%s5405_s9 + $0xb0] sm:$0xff] %vm107_vm1, %v3518_v0  ;;  %v2690_v58 = vpop.f32.mrb[109].mxu1 }
 0x58d   :  { %2757 = vst.msk [vmem:[%s5405_s9 + $0xa0] sm:$0xff] %vm107_vm1, %v2690_v58  ;;  %v3519_v9 = vpop.f32.mrb[110].mxu1 }
 0x58e   :  { %2760 = vst.msk [vmem:[%s5405_s9 + $0xb8] sm:$0xff] %vm107_vm1, %v3519_v9  ;;  %v2693_v35 = vpop.f32.mrb[111].mxu1 }
 0x58f   :  { %2758 = vst.msk [vmem:[%s5405_s9 + $0xa8] sm:$0xff] %vm107_vm1, %v2693_v35 }

</bundles_post_ra>
